<compile_context>
chip_gen: v5e
topology: v5e:2x2
jax: 0.10.0
libtpu: 0.0.40
codegen_flags: <defaults>
</compile_context>

<pallas_src>
import functools

import jax
import jax.numpy as jnp
from jax.experimental import pallas as pl
from jax.experimental.pallas import tpu as pltpu


def _pick_time_chunk(T, cap=32):
    """Largest divisor of T that is <= cap (bounds the f32 xproj scratch)."""
    for tc in range(min(T, cap), 0, -1):
        if T % tc == 0:
            return tc
    return T


def _fused_lstm_fc_kernel(num_layers, T, B, H, Tc, x_ref, *refs):
    """Fused multi-layer LSTM + final Linear (single gridless invocation).

    refs layout:
      [w_ih_0, w_hh_0, b_0, ..., w_ih_{L-1}, w_hh_{L-1}, b_{L-1},
       w_fc, b_fc,                     # remaining inputs
       out,                            # output
       xproj_scratch,                  # (2, Tc*B, 4H) f32 double buffer
       seq_scratch (only if L > 1)]    # (T*B, H) inter-layer hidden sequence
    """
    idx = 0
    layer_w = []
    for _ in range(num_layers):
        layer_w.append((refs[idx], refs[idx + 1], refs[idx + 2]))
        idx += 3
    wfc_ref, bfc_ref = refs[idx], refs[idx + 1]
    out_ref = refs[idx + 2]
    xproj_scr = refs[idx + 3]
    seq_scr = refs[idx + 4] if num_layers > 1 else None

    cdt = jnp.bfloat16            # MXU input dtype; accumulation/state stay f32
    num_chunks = T // Tc
    chunk_rows = Tc * B

    def sigmoid(v):
        # tanh form: single EUP push, exact (no approx-reciprocal error).
        return 0.5 * jnp.tanh(0.5 * v) + 0.5

    h_top = None
    for l, (wih_ref, whh_ref, b_ref) in enumerate(layer_w):
        is_last = l == num_layers - 1
        wih = wih_ref[...]        # (Din, 4H) bf16, hoisted
        whh = whh_ref[...]        # (H, 4H)   bf16, hoisted
        bias = b_ref[...]         # (1, 4H)   f32

        def input_chunk(ck, _l=l):
            row0 = ck * chunk_rows           # ck is static -> static offset
            if _l == 0:
                return x_ref[pl.ds(row0, chunk_rows), :]            # bf16
            return seq_scr[pl.ds(row0, chunk_rows), :].astype(cdt)

        def gemm_chunk(ck, slot, _wih=wih, _bias=bias, _l=l):
            # Hoisted input projection + bias for one time chunk (one big GEMM).
            xproj_scr[slot] = (
                jnp.dot(input_chunk(ck, _l), _wih,
                        preferred_element_type=jnp.float32) + _bias)

        gemm_chunk(0, 0)                     # software-pipeline prologue

        h = jnp.zeros((B, H), jnp.float32)
        c = jnp.zeros((B, H), jnp.float32)

        for ck in range(num_chunks):         # static chunk loop
            slot = ck & 1
            if ck + 1 < num_chunks:
                # Issue next chunk's GEMM before consuming this one so the MXU
                # work hides under the latency-bound recurrence.
                gemm_chunk(ck + 1, 1 - slot)

            def step(s, carry, _slot=slot, _ck=ck, _whh=whh, _is_last=is_last):
                h, c = carry                 # f32 state
                row = s * B
                if B % 8 == 0:
                    row = pl.multiple_of(row, 8)
                # TODO(synk): hold W_hh in the MXU across timesteps via
                # pltpu.matmul_push_rhs / matmul_acc_lhs / matmul_pop to drop
                # the per-step weight push from the serial chain.
                gates = xproj_scr[_slot, pl.ds(row, B), :] + jnp.dot(
                    h.astype(cdt), _whh, preferred_element_type=jnp.float32)
                # Full-(B,4H)-tile nonlinearities: 2 EUP pushes per step.
                sig_all = sigmoid(gates)
                tanh_all = jnp.tanh(gates)
                i_g = sig_all[:, 0 * H:1 * H]
                f_g = sig_all[:, 1 * H:2 * H]
                g_g = tanh_all[:, 2 * H:3 * H]
                o_g = sig_all[:, 3 * H:4 * H]
                c_new = f_g * c + i_g * g_g
                h_new = o_g * jnp.tanh(c_new)
                if not _is_last:
                    # Feed the next layer; the top layer only needs its final h.
                    grow = (_ck * Tc + s) * B
                    if B % 8 == 0:
                        grow = pl.multiple_of(grow, 8)
                    seq_scr[pl.ds(grow, B), :] = h_new.astype(seq_scr.dtype)
                return h_new, c_new

            h, c = jax.lax.fori_loop(0, Tc, step, (h, c), unroll=min(Tc, 8))
        h_top = h

    # Final Linear on the last timestep's hidden state (lane-padded output so
    # the store is a full unmasked vst; the wrapper slices back to (B, O)).
    out_ref[...] = (
        jnp.dot(h_top.astype(cdt), wfc_ref[...],
                preferred_element_type=jnp.float32) + bfc_ref[...]
    ).astype(out_ref.dtype)


def init_params(key, input_dim, hidden_dim, layer_dim, output_dim):
    """nn.LSTM / nn.Linear shaped params, pre-laid-out for the fused kernel."""
    H = hidden_dim
    k = 1.0 / (hidden_dim ** 0.5)
    keys = jax.random.split(key, 4 * layer_dim + 2)

    layers = []
    for l in range(layer_dim):
        in_dim = input_dim if l == 0 else hidden_dim
        k0, k1, k2, k3 = keys[4 * l:4 * l + 4]
        w_ih = jax.random.uniform(k0, (4 * H, in_dim), jnp.float32, -k, k)
        w_hh = jax.random.uniform(k1, (4 * H, H), jnp.float32, -k, k)
        b_ih = jax.random.uniform(k2, (4 * H,), jnp.float32, -k, k)
        b_hh = jax.random.uniform(k3, (4 * H,), jnp.float32, -k, k)
        layers.append({
            "w_ih_t": w_ih.T.astype(jnp.bfloat16),        # (in_dim, 4H) bf16
            "w_hh_t": w_hh.T.astype(jnp.bfloat16),        # (H, 4H)      bf16
            "bias": (b_ih + b_hh).reshape(1, 4 * H),      # (1, 4H)      f32
        })

    O = output_dim
    O_pad = max(128, ((O + 127) // 128) * 128)            # lane-dense fc output
    fc_w = jax.random.uniform(keys[-2], (O, H), jnp.float32, -k, k)
    fc_b = jax.random.uniform(keys[-1], (O,), jnp.float32, -k, k)
    fc_w_t = jnp.zeros((H, O_pad), jnp.float32).at[:, :O].set(fc_w.T)
    fc_b_p = jnp.zeros((1, O_pad), jnp.float32).at[0, :O].set(fc_b)
    return {
        "layers": layers,
        "fc_w_t": fc_w_t.astype(jnp.bfloat16),            # (H, O_pad) bf16
        "fc_b": fc_b_p,                                    # (1, O_pad) f32
    }


@functools.partial(jax.jit, static_argnames=("output_dim",))
def my_lstm_forward(params, x, *, output_dim):
    """x: (B, T, D) batch-first (as in the PyTorch module). Returns (B, O)."""
    B, T, D = x.shape
    layers = params["layers"]
    num_layers = len(layers)
    H = layers[0]["w_hh_t"].shape[0]
    O_pad = params["fc_w_t"].shape[1]
    Tc = _pick_time_chunk(T)

    # Time-major, flattened to (T*B, D): the per-layer input projection becomes
    # chunked MXU GEMMs instead of T tiny ones.
    x_tm = jnp.transpose(x, (1, 0, 2)).reshape(T * B, D).astype(jnp.bfloat16)

    inputs = [x_tm]
    for lyr in layers:
        inputs += [lyr["w_ih_t"], lyr["w_hh_t"], lyr["bias"]]
    inputs += [params["fc_w_t"], params["fc_b"]]

    # bf16 inter-layer scratch only when the (16,128) bf16 sublane tiling is
    # honoured by B; otherwise keep f32 to avoid masked sub-tile stores.
    seq_dtype = jnp.bfloat16 if B % 16 == 0 else jnp.float32
    scratch = [pltpu.VMEM((2, Tc * B, 4 * H), jnp.float32)]   # chunked xproj
    if num_layers > 1:
        scratch.append(pltpu.VMEM((T * B, H), seq_dtype))     # inter-layer h

    # --- cost / VMEM bookkeeping (static shape math) ----------------------
    flops = 0
    for l in range(num_layers):
        din = D if l == 0 else H
        flops += 2 * T * B * din * 4 * H        # hoisted input projection
        flops += 2 * T * B * H * 4 * H          # recurrent h @ W_hh
    flops += 2 * B * H * O_pad                  # final fc
    transcendentals = num_layers * T * B * (4 * H + 4 * H + H)
    in_bytes = sum(int(a.size) * a.dtype.itemsize for a in inputs)
    out_bytes = B * O_pad * 4
    scratch_bytes = 2 * Tc * B * 4 * H * 4
    if num_layers > 1:
        scratch_bytes += T * B * H * (2 if seq_dtype == jnp.bfloat16 else 4)
    vmem_need = in_bytes + out_bytes + scratch_bytes
    vmem_limit = int(min(max(2 * vmem_need + (1 << 20), 4 << 20), 100 << 20))

    kernel = functools.partial(_fused_lstm_fc_kernel, num_layers, T, B, H, Tc)

    out_pad = pl.pallas_call(
        kernel,
        out_shape=jax.ShapeDtypeStruct((B, O_pad), jnp.float32),
        in_specs=[pl.BlockSpec(memory_space=pltpu.MemorySpace.VMEM)] * len(inputs),
        out_specs=pl.BlockSpec(memory_space=pltpu.MemorySpace.VMEM),
        scratch_shapes=scratch,
        compiler_params=pltpu.CompilerParams(vmem_limit_bytes=vmem_limit),
        cost_estimate=pl.CostEstimate(
            flops=flops,
            transcendentals=transcendentals,
            bytes_accessed=in_bytes + out_bytes),
    )(*inputs)

    # TODO(synk): v7x — add a batch-parallel leading grid axis
    #   (dimension_semantics=("parallel",)) so both TensorCores run independent
    #   batch shards of the recurrence (needs B large enough for >=8-row shards
    #   per core; at B=8 the shards would violate the sublane minimum).
    # TODO(synk): for large H / many layers, stream per-layer weights from HBM
    #   (memory_space=pl.ANY + double-buffered pltpu.make_async_copy) instead of
    #   keeping all layers VMEM-resident.
    return out_pad[:, :output_dim]


if __name__ == "__main__":
    # Small shapes consistent with the module's forward.
    batch, seq = 8, 8
    input_dim, hidden_dim, layer_dim, output_dim = 32, 32, 2, 8

    key = jax.random.PRNGKey(0)
    kx, kp = jax.random.split(key)
    x = jax.random.normal(kx, (batch, seq, input_dim), jnp.float32)
    params = init_params(kp, input_dim, hidden_dim, layer_dim, output_dim)

    out = my_lstm_forward(params, x, output_dim=output_dim)
    jax.block_until_ready(out)
    assert out.shape == (batch, output_dim), out.shape
    print("KERNEL_OK")
</pallas_src>

<mosaic_0001>
module attributes {stable_mosaic.version = 11 : i64} {
  func.func @_fused_lstm_fc_kernel(%arg0: memref<64x32xbf16, #tpu.memory_space<vmem>>, %arg1: memref<32x128xbf16, #tpu.memory_space<vmem>>, %arg2: memref<32x128xbf16, #tpu.memory_space<vmem>>, %arg3: memref<1x128xf32, #tpu.memory_space<vmem>>, %arg4: memref<32x128xbf16, #tpu.memory_space<vmem>>, %arg5: memref<32x128xbf16, #tpu.memory_space<vmem>>, %arg6: memref<1x128xf32, #tpu.memory_space<vmem>>, %arg7: memref<32x128xbf16, #tpu.memory_space<vmem>>, %arg8: memref<1x128xf32, #tpu.memory_space<vmem>>, %arg9: memref<8x128xf32, #tpu.memory_space<vmem>>, %arg10: memref<2x64x128xf32, #tpu.memory_space<vmem>>, %arg11: memref<64x32xf32, #tpu.memory_space<vmem>>) attributes {dimension_semantics = [], scalar_prefetch = 0 : i64, scratch_operands = 2 : i64, tpu.core_type = #tpu.core_type<tc>} {
    %c0 = arith.constant 0 : index
    %c0_0 = arith.constant 0 : index
    %0 = vector.load %arg1[%c0, %c0_0] : memref<32x128xbf16, #tpu.memory_space<vmem>>, vector<32x128xbf16>
    %c0_1 = arith.constant 0 : index
    %c0_2 = arith.constant 0 : index
    %1 = vector.load %arg2[%c0_1, %c0_2] : memref<32x128xbf16, #tpu.memory_space<vmem>>, vector<32x128xbf16>
    %c0_3 = arith.constant 0 : index
    %c0_4 = arith.constant 0 : index
    %2 = vector.load %arg3[%c0_3, %c0_4] : memref<1x128xf32, #tpu.memory_space<vmem>>, vector<1x128xf32>
    %c0_5 = arith.constant 0 : index
    %c0_6 = arith.constant 0 : index
    %3 = vector.load %arg0[%c0_5, %c0_6] : memref<64x32xbf16, #tpu.memory_space<vmem>>, vector<64x32xbf16>
    %cst = arith.constant dense<0.000000e+00> : vector<64x128xf32>
    %4 = tpu.matmul %3, %0, %cst {dimension_numbers = #tpu.dot_dimension_numbers<[1], [0], [0], [1], [0, 0, 1, 1], [], []>} : vector<64x32xbf16>, vector<32x128xbf16>, vector<64x128xf32> -> vector<64x128xf32>
    %5 = vector.broadcast %2 : vector<1x128xf32> to vector<64x128xf32>
    %6 = arith.addf %4, %5 : vector<64x128xf32>
    %c0_7 = arith.constant 0 : index
    %c0_8 = arith.constant 0 : index
    %c0_9 = arith.constant 0 : index
    %7 = vector.load %arg10[%c0_7, %c0_8, %c0_9] : memref<2x64x128xf32, #tpu.memory_space<vmem>>, vector<1x64x128xf32>
    %8 = vector.shape_cast %7 : vector<1x64x128xf32> to vector<64x128xf32>
    %9 = vector.shape_cast %6 : vector<64x128xf32> to vector<1x64x128xf32>
    tpu.vector_store %arg10[%c0_7, %c0_8, %c0_9], %9 {strides = array<i32>} : memref<2x64x128xf32, #tpu.memory_space<vmem>>, vector<1x64x128xf32>,
    %cst_10 = arith.constant 0.000000e+00 : f32
    %10 = vector.broadcast %cst_10 : f32 to vector<8x32xf32>
    %cst_11 = arith.constant 0.000000e+00 : f32
    %11 = vector.broadcast %cst_11 : f32 to vector<8x32xf32>
    %c0_i32 = arith.constant 0 : i32
    %c8_i32 = arith.constant 8 : i32
    %12 = arith.muli %c0_i32, %c8_i32 : i32
    %13 = tpu.assume_multiple %12, 8 : i32
    %c0_12 = arith.constant 0 : index
    %14 = arith.index_cast %13 : i32 to index
    %c0_13 = arith.constant 0 : index
    %15 = vector.load %arg10[%c0_12, %14, %c0_13] : memref<2x64x128xf32, #tpu.memory_space<vmem>>, vector<1x8x128xf32>
    %16 = vector.shape_cast %15 : vector<1x8x128xf32> to vector<8x128xf32>
    %17 = arith.truncf %10 : vector<8x32xf32> to vector<8x32xbf16>
    %cst_14 = arith.constant dense<0.000000e+00> : vector<8x128xf32>
    %18 = tpu.matmul %17, %1, %cst_14 {dimension_numbers = #tpu.dot_dimension_numbers<[1], [0], [0], [1], [0, 0, 1, 1], [], []>} : vector<8x32xbf16>, vector<32x128xbf16>, vector<8x128xf32> -> vector<8x128xf32>
    %19 = arith.addf %16, %18 : vector<8x128xf32>
    %cst_15 = arith.constant 5.000000e-01 : f32
    %20 = vector.broadcast %cst_15 : f32 to vector<8x128xf32>
    %21 = arith.mulf %20, %19 : vector<8x128xf32>
    %22 = math.tanh %21 : vector<8x128xf32>
    %cst_16 = arith.constant 5.000000e-01 : f32
    %23 = vector.broadcast %cst_16 : f32 to vector<8x128xf32>
    %24 = arith.mulf %23, %22 : vector<8x128xf32>
    %cst_17 = arith.constant 5.000000e-01 : f32
    %25 = vector.broadcast %cst_17 : f32 to vector<8x128xf32>
    %26 = arith.addf %24, %25 : vector<8x128xf32>
    %27 = math.tanh %19 : vector<8x128xf32>
    %28 = vector.extract_strided_slice %26 {offsets = [0, 0], sizes = [8, 32], strides = [1, 1]} : vector<8x128xf32> to vector<8x32xf32>
    %29 = vector.extract_strided_slice %26 {offsets = [0, 32], sizes = [8, 32], strides = [1, 1]} : vector<8x128xf32> to vector<8x32xf32>
    %30 = vector.extract_strided_slice %27 {offsets = [0, 64], sizes = [8, 32], strides = [1, 1]} : vector<8x128xf32> to vector<8x32xf32>
    %31 = vector.extract_strided_slice %26 {offsets = [0, 96], sizes = [8, 32], strides = [1, 1]} : vector<8x128xf32> to vector<8x32xf32>
    %32 = arith.mulf %29, %11 : vector<8x32xf32>
    %33 = arith.mulf %28, %30 : vector<8x32xf32>
    %34 = arith.addf %32, %33 : vector<8x32xf32>
    %35 = math.tanh %34 : vector<8x32xf32>
    %36 = arith.mulf %31, %35 : vector<8x32xf32>
    %c0_i32_18 = arith.constant 0 : i32
    %37 = arith.addi %c0_i32_18, %c0_i32 : i32
    %c8_i32_19 = arith.constant 8 : i32
    %38 = arith.muli %37, %c8_i32_19 : i32
    %39 = tpu.assume_multiple %38, 8 : i32
    %40 = arith.index_cast %39 : i32 to index
    %c0_20 = arith.constant 0 : index
    %41 = vector.load %arg11[%40, %c0_20] : memref<64x32xf32, #tpu.memory_space<vmem>>, vector<8x32xf32>
    tpu.vector_store %arg11[%40, %c0_20], %36 {strides = array<i32>} : memref<64x32xf32, #tpu.memory_space<vmem>>, vector<8x32xf32>,
    %c1_i32 = arith.constant 1 : i32
    %c8_i32_21 = arith.constant 8 : i32
    %42 = arith.muli %c1_i32, %c8_i32_21 : i32
    %43 = tpu.assume_multiple %42, 8 : i32
    %c0_22 = arith.constant 0 : index
    %44 = arith.index_cast %43 : i32 to index
    %c0_23 = arith.constant 0 : index
    %45 = vector.load %arg10[%c0_22, %44, %c0_23] : memref<2x64x128xf32, #tpu.memory_space<vmem>>, vector<1x8x128xf32>
    %46 = vector.shape_cast %45 : vector<1x8x128xf32> to vector<8x128xf32>
    %47 = arith.truncf %36 : vector<8x32xf32> to vector<8x32xbf16>
    %cst_24 = arith.constant dense<0.000000e+00> : vector<8x128xf32>
    %48 = tpu.matmul %47, %1, %cst_24 {dimension_numbers = #tpu.dot_dimension_numbers<[1], [0], [0], [1], [0, 0, 1, 1], [], []>} : vector<8x32xbf16>, vector<32x128xbf16>, vector<8x128xf32> -> vector<8x128xf32>
    %49 = arith.addf %46, %48 : vector<8x128xf32>
    %cst_25 = arith.constant 5.000000e-01 : f32
    %50 = vector.broadcast %cst_25 : f32 to vector<8x128xf32>
    %51 = arith.mulf %50, %49 : vector<8x128xf32>
    %52 = math.tanh %51 : vector<8x128xf32>
    %cst_26 = arith.constant 5.000000e-01 : f32
    %53 = vector.broadcast %cst_26 : f32 to vector<8x128xf32>
    %54 = arith.mulf %53, %52 : vector<8x128xf32>
    %cst_27 = arith.constant 5.000000e-01 : f32
    %55 = vector.broadcast %cst_27 : f32 to vector<8x128xf32>
    %56 = arith.addf %54, %55 : vector<8x128xf32>
    %57 = math.tanh %49 : vector<8x128xf32>
    %58 = vector.extract_strided_slice %56 {offsets = [0, 0], sizes = [8, 32], strides = [1, 1]} : vector<8x128xf32> to vector<8x32xf32>
    %59 = vector.extract_strided_slice %56 {offsets = [0, 32], sizes = [8, 32], strides = [1, 1]} : vector<8x128xf32> to vector<8x32xf32>
    %60 = vector.extract_strided_slice %57 {offsets = [0, 64], sizes = [8, 32], strides = [1, 1]} : vector<8x128xf32> to vector<8x32xf32>
    %61 = vector.extract_strided_slice %56 {offsets = [0, 96], sizes = [8, 32], strides = [1, 1]} : vector<8x128xf32> to vector<8x32xf32>
    %62 = arith.mulf %59, %34 : vector<8x32xf32>
    %63 = arith.mulf %58, %60 : vector<8x32xf32>
    %64 = arith.addf %62, %63 : vector<8x32xf32>
    %65 = math.tanh %64 : vector<8x32xf32>
    %66 = arith.mulf %61, %65 : vector<8x32xf32>
    %c0_i32_28 = arith.constant 0 : i32
    %67 = arith.addi %c0_i32_28, %c1_i32 : i32
    %c8_i32_29 = arith.constant 8 : i32
    %68 = arith.muli %67, %c8_i32_29 : i32
    %69 = tpu.assume_multiple %68, 8 : i32
    %70 = arith.index_cast %69 : i32 to index
    %c0_30 = arith.constant 0 : index
    %71 = vector.load %arg11[%70, %c0_30] : memref<64x32xf32, #tpu.memory_space<vmem>>, vector<8x32xf32>
    tpu.vector_store %arg11[%70, %c0_30], %66 {strides = array<i32>} : memref<64x32xf32, #tpu.memory_space<vmem>>, vector<8x32xf32>,
    %c2_i32 = arith.constant 2 : i32
    %c8_i32_31 = arith.constant 8 : i32
    %72 = arith.muli %c2_i32, %c8_i32_31 : i32
    %73 = tpu.assume_multiple %72, 8 : i32
    %c0_32 = arith.constant 0 : index
    %74 = arith.index_cast %73 : i32 to index
    %c0_33 = arith.constant 0 : index
    %75 = vector.load %arg10[%c0_32, %74, %c0_33] : memref<2x64x128xf32, #tpu.memory_space<vmem>>, vector<1x8x128xf32>
    %76 = vector.shape_cast %75 : vector<1x8x128xf32> to vector<8x128xf32>
    %77 = arith.truncf %66 : vector<8x32xf32> to vector<8x32xbf16>
    %cst_34 = arith.constant dense<0.000000e+00> : vector<8x128xf32>
    %78 = tpu.matmul %77, %1, %cst_34 {dimension_numbers = #tpu.dot_dimension_numbers<[1], [0], [0], [1], [0, 0, 1, 1], [], []>} : vector<8x32xbf16>, vector<32x128xbf16>, vector<8x128xf32> -> vector<8x128xf32>
    %79 = arith.addf %76, %78 : vector<8x128xf32>
    %cst_35 = arith.constant 5.000000e-01 : f32
    %80 = vector.broadcast %cst_35 : f32 to vector<8x128xf32>
    %81 = arith.mulf %80, %79 : vector<8x128xf32>
    %82 = math.tanh %81 : vector<8x128xf32>
    %cst_36 = arith.constant 5.000000e-01 : f32
    %83 = vector.broadcast %cst_36 : f32 to vector<8x128xf32>
    %84 = arith.mulf %83, %82 : vector<8x128xf32>
    %cst_37 = arith.constant 5.000000e-01 : f32
    %85 = vector.broadcast %cst_37 : f32 to vector<8x128xf32>
    %86 = arith.addf %84, %85 : vector<8x128xf32>
    %87 = math.tanh %79 : vector<8x128xf32>
    %88 = vector.extract_strided_slice %86 {offsets = [0, 0], sizes = [8, 32], strides = [1, 1]} : vector<8x128xf32> to vector<8x32xf32>
    %89 = vector.extract_strided_slice %86 {offsets = [0, 32], sizes = [8, 32], strides = [1, 1]} : vector<8x128xf32> to vector<8x32xf32>
    %90 = vector.extract_strided_slice %87 {offsets = [0, 64], sizes = [8, 32], strides = [1, 1]} : vector<8x128xf32> to vector<8x32xf32>
    %91 = vector.extract_strided_slice %86 {offsets = [0, 96], sizes = [8, 32], strides = [1, 1]} : vector<8x128xf32> to vector<8x32xf32>
    %92 = arith.mulf %89, %64 : vector<8x32xf32>
    %93 = arith.mulf %88, %90 : vector<8x32xf32>
    %94 = arith.addf %92, %93 : vector<8x32xf32>
    %95 = math.tanh %94 : vector<8x32xf32>
    %96 = arith.mulf %91, %95 : vector<8x32xf32>
    %c0_i32_38 = arith.constant 0 : i32
    %97 = arith.addi %c0_i32_38, %c2_i32 : i32
    %c8_i32_39 = arith.constant 8 : i32
    %98 = arith.muli %97, %c8_i32_39 : i32
    %99 = tpu.assume_multiple %98, 8 : i32
    %100 = arith.index_cast %99 : i32 to index
    %c0_40 = arith.constant 0 : index
    %101 = vector.load %arg11[%100, %c0_40] : memref<64x32xf32, #tpu.memory_space<vmem>>, vector<8x32xf32>
    tpu.vector_store %arg11[%100, %c0_40], %96 {strides = array<i32>} : memref<64x32xf32, #tpu.memory_space<vmem>>, vector<8x32xf32>,
    %c3_i32 = arith.constant 3 : i32
    %c8_i32_41 = arith.constant 8 : i32
    %102 = arith.muli %c3_i32, %c8_i32_41 : i32
    %103 = tpu.assume_multiple %102, 8 : i32
    %c0_42 = arith.constant 0 : index
    %104 = arith.index_cast %103 : i32 to index
    %c0_43 = arith.constant 0 : index
    %105 = vector.load %arg10[%c0_42, %104, %c0_43] : memref<2x64x128xf32, #tpu.memory_space<vmem>>, vector<1x8x128xf32>
    %106 = vector.shape_cast %105 : vector<1x8x128xf32> to vector<8x128xf32>
    %107 = arith.truncf %96 : vector<8x32xf32> to vector<8x32xbf16>
    %cst_44 = arith.constant dense<0.000000e+00> : vector<8x128xf32>
    %108 = tpu.matmul %107, %1, %cst_44 {dimension_numbers = #tpu.dot_dimension_numbers<[1], [0], [0], [1], [0, 0, 1, 1], [], []>} : vector<8x32xbf16>, vector<32x128xbf16>, vector<8x128xf32> -> vector<8x128xf32>
    %109 = arith.addf %106, %108 : vector<8x128xf32>
    %cst_45 = arith.constant 5.000000e-01 : f32
    %110 = vector.broadcast %cst_45 : f32 to vector<8x128xf32>
    %111 = arith.mulf %110, %109 : vector<8x128xf32>
    %112 = math.tanh %111 : vector<8x128xf32>
    %cst_46 = arith.constant 5.000000e-01 : f32
    %113 = vector.broadcast %cst_46 : f32 to vector<8x128xf32>
    %114 = arith.mulf %113, %112 : vector<8x128xf32>
    %cst_47 = arith.constant 5.000000e-01 : f32
    %115 = vector.broadcast %cst_47 : f32 to vector<8x128xf32>
    %116 = arith.addf %114, %115 : vector<8x128xf32>
    %117 = math.tanh %109 : vector<8x128xf32>
    %118 = vector.extract_strided_slice %116 {offsets = [0, 0], sizes = [8, 32], strides = [1, 1]} : vector<8x128xf32> to vector<8x32xf32>
    %119 = vector.extract_strided_slice %116 {offsets = [0, 32], sizes = [8, 32], strides = [1, 1]} : vector<8x128xf32> to vector<8x32xf32>
    %120 = vector.extract_strided_slice %117 {offsets = [0, 64], sizes = [8, 32], strides = [1, 1]} : vector<8x128xf32> to vector<8x32xf32>
    %121 = vector.extract_strided_slice %116 {offsets = [0, 96], sizes = [8, 32], strides = [1, 1]} : vector<8x128xf32> to vector<8x32xf32>
    %122 = arith.mulf %119, %94 : vector<8x32xf32>
    %123 = arith.mulf %118, %120 : vector<8x32xf32>
    %124 = arith.addf %122, %123 : vector<8x32xf32>
    %125 = math.tanh %124 : vector<8x32xf32>
    %126 = arith.mulf %121, %125 : vector<8x32xf32>
    %c0_i32_48 = arith.constant 0 : i32
    %127 = arith.addi %c0_i32_48, %c3_i32 : i32
    %c8_i32_49 = arith.constant 8 : i32
    %128 = arith.muli %127, %c8_i32_49 : i32
    %129 = tpu.assume_multiple %128, 8 : i32
    %130 = arith.index_cast %129 : i32 to index
    %c0_50 = arith.constant 0 : index
    %131 = vector.load %arg11[%130, %c0_50] : memref<64x32xf32, #tpu.memory_space<vmem>>, vector<8x32xf32>
    tpu.vector_store %arg11[%130, %c0_50], %126 {strides = array<i32>} : memref<64x32xf32, #tpu.memory_space<vmem>>, vector<8x32xf32>,
    %c4_i32 = arith.constant 4 : i32
    %c8_i32_51 = arith.constant 8 : i32
    %132 = arith.muli %c4_i32, %c8_i32_51 : i32
    %133 = tpu.assume_multiple %132, 8 : i32
    %c0_52 = arith.constant 0 : index
    %134 = arith.index_cast %133 : i32 to index
    %c0_53 = arith.constant 0 : index
    %135 = vector.load %arg10[%c0_52, %134, %c0_53] : memref<2x64x128xf32, #tpu.memory_space<vmem>>, vector<1x8x128xf32>
    %136 = vector.shape_cast %135 : vector<1x8x128xf32> to vector<8x128xf32>
    %137 = arith.truncf %126 : vector<8x32xf32> to vector<8x32xbf16>
    %cst_54 = arith.constant dense<0.000000e+00> : vector<8x128xf32>
    %138 = tpu.matmul %137, %1, %cst_54 {dimension_numbers = #tpu.dot_dimension_numbers<[1], [0], [0], [1], [0, 0, 1, 1], [], []>} : vector<8x32xbf16>, vector<32x128xbf16>, vector<8x128xf32> -> vector<8x128xf32>
    %139 = arith.addf %136, %138 : vector<8x128xf32>
    %cst_55 = arith.constant 5.000000e-01 : f32
    %140 = vector.broadcast %cst_55 : f32 to vector<8x128xf32>
    %141 = arith.mulf %140, %139 : vector<8x128xf32>
    %142 = math.tanh %141 : vector<8x128xf32>
    %cst_56 = arith.constant 5.000000e-01 : f32
    %143 = vector.broadcast %cst_56 : f32 to vector<8x128xf32>
    %144 = arith.mulf %143, %142 : vector<8x128xf32>
    %cst_57 = arith.constant 5.000000e-01 : f32
    %145 = vector.broadcast %cst_57 : f32 to vector<8x128xf32>
    %146 = arith.addf %144, %145 : vector<8x128xf32>
    %147 = math.tanh %139 : vector<8x128xf32>
    %148 = vector.extract_strided_slice %146 {offsets = [0, 0], sizes = [8, 32], strides = [1, 1]} : vector<8x128xf32> to vector<8x32xf32>
    %149 = vector.extract_strided_slice %146 {offsets = [0, 32], sizes = [8, 32], strides = [1, 1]} : vector<8x128xf32> to vector<8x32xf32>
    %150 = vector.extract_strided_slice %147 {offsets = [0, 64], sizes = [8, 32], strides = [1, 1]} : vector<8x128xf32> to vector<8x32xf32>
    %151 = vector.extract_strided_slice %146 {offsets = [0, 96], sizes = [8, 32], strides = [1, 1]} : vector<8x128xf32> to vector<8x32xf32>
    %152 = arith.mulf %149, %124 : vector<8x32xf32>
    %153 = arith.mulf %148, %150 : vector<8x32xf32>
    %154 = arith.addf %152, %153 : vector<8x32xf32>
    %155 = math.tanh %154 : vector<8x32xf32>
    %156 = arith.mulf %151, %155 : vector<8x32xf32>
    %c0_i32_58 = arith.constant 0 : i32
    %157 = arith.addi %c0_i32_58, %c4_i32 : i32
    %c8_i32_59 = arith.constant 8 : i32
    %158 = arith.muli %157, %c8_i32_59 : i32
    %159 = tpu.assume_multiple %158, 8 : i32
    %160 = arith.index_cast %159 : i32 to index
    %c0_60 = arith.constant 0 : index
    %161 = vector.load %arg11[%160, %c0_60] : memref<64x32xf32, #tpu.memory_space<vmem>>, vector<8x32xf32>
    tpu.vector_store %arg11[%160, %c0_60], %156 {strides = array<i32>} : memref<64x32xf32, #tpu.memory_space<vmem>>, vector<8x32xf32>,
    %c5_i32 = arith.constant 5 : i32
    %c8_i32_61 = arith.constant 8 : i32
    %162 = arith.muli %c5_i32, %c8_i32_61 : i32
    %163 = tpu.assume_multiple %162, 8 : i32
    %c0_62 = arith.constant 0 : index
    %164 = arith.index_cast %163 : i32 to index
    %c0_63 = arith.constant 0 : index
    %165 = vector.load %arg10[%c0_62, %164, %c0_63] : memref<2x64x128xf32, #tpu.memory_space<vmem>>, vector<1x8x128xf32>
    %166 = vector.shape_cast %165 : vector<1x8x128xf32> to vector<8x128xf32>
    %167 = arith.truncf %156 : vector<8x32xf32> to vector<8x32xbf16>
    %cst_64 = arith.constant dense<0.000000e+00> : vector<8x128xf32>
    %168 = tpu.matmul %167, %1, %cst_64 {dimension_numbers = #tpu.dot_dimension_numbers<[1], [0], [0], [1], [0, 0, 1, 1], [], []>} : vector<8x32xbf16>, vector<32x128xbf16>, vector<8x128xf32> -> vector<8x128xf32>
    %169 = arith.addf %166, %168 : vector<8x128xf32>
    %cst_65 = arith.constant 5.000000e-01 : f32
    %170 = vector.broadcast %cst_65 : f32 to vector<8x128xf32>
    %171 = arith.mulf %170, %169 : vector<8x128xf32>
    %172 = math.tanh %171 : vector<8x128xf32>
    %cst_66 = arith.constant 5.000000e-01 : f32
    %173 = vector.broadcast %cst_66 : f32 to vector<8x128xf32>
    %174 = arith.mulf %173, %172 : vector<8x128xf32>
    %cst_67 = arith.constant 5.000000e-01 : f32
    %175 = vector.broadcast %cst_67 : f32 to vector<8x128xf32>
    %176 = arith.addf %174, %175 : vector<8x128xf32>
    %177 = math.tanh %169 : vector<8x128xf32>
    %178 = vector.extract_strided_slice %176 {offsets = [0, 0], sizes = [8, 32], strides = [1, 1]} : vector<8x128xf32> to vector<8x32xf32>
    %179 = vector.extract_strided_slice %176 {offsets = [0, 32], sizes = [8, 32], strides = [1, 1]} : vector<8x128xf32> to vector<8x32xf32>
    %180 = vector.extract_strided_slice %177 {offsets = [0, 64], sizes = [8, 32], strides = [1, 1]} : vector<8x128xf32> to vector<8x32xf32>
    %181 = vector.extract_strided_slice %176 {offsets = [0, 96], sizes = [8, 32], strides = [1, 1]} : vector<8x128xf32> to vector<8x32xf32>
    %182 = arith.mulf %179, %154 : vector<8x32xf32>
    %183 = arith.mulf %178, %180 : vector<8x32xf32>
    %184 = arith.addf %182, %183 : vector<8x32xf32>
    %185 = math.tanh %184 : vector<8x32xf32>
    %186 = arith.mulf %181, %185 : vector<8x32xf32>
    %c0_i32_68 = arith.constant 0 : i32
    %187 = arith.addi %c0_i32_68, %c5_i32 : i32
    %c8_i32_69 = arith.constant 8 : i32
    %188 = arith.muli %187, %c8_i32_69 : i32
    %189 = tpu.assume_multiple %188, 8 : i32
    %190 = arith.index_cast %189 : i32 to index
    %c0_70 = arith.constant 0 : index
    %191 = vector.load %arg11[%190, %c0_70] : memref<64x32xf32, #tpu.memory_space<vmem>>, vector<8x32xf32>
    tpu.vector_store %arg11[%190, %c0_70], %186 {strides = array<i32>} : memref<64x32xf32, #tpu.memory_space<vmem>>, vector<8x32xf32>,
    %c6_i32 = arith.constant 6 : i32
    %c8_i32_71 = arith.constant 8 : i32
    %192 = arith.muli %c6_i32, %c8_i32_71 : i32
    %193 = tpu.assume_multiple %192, 8 : i32
    %c0_72 = arith.constant 0 : index
    %194 = arith.index_cast %193 : i32 to index
    %c0_73 = arith.constant 0 : index
    %195 = vector.load %arg10[%c0_72, %194, %c0_73] : memref<2x64x128xf32, #tpu.memory_space<vmem>>, vector<1x8x128xf32>
    %196 = vector.shape_cast %195 : vector<1x8x128xf32> to vector<8x128xf32>
    %197 = arith.truncf %186 : vector<8x32xf32> to vector<8x32xbf16>
    %cst_74 = arith.constant dense<0.000000e+00> : vector<8x128xf32>
    %198 = tpu.matmul %197, %1, %cst_74 {dimension_numbers = #tpu.dot_dimension_numbers<[1], [0], [0], [1], [0, 0, 1, 1], [], []>} : vector<8x32xbf16>, vector<32x128xbf16>, vector<8x128xf32> -> vector<8x128xf32>
    %199 = arith.addf %196, %198 : vector<8x128xf32>
    %cst_75 = arith.constant 5.000000e-01 : f32
    %200 = vector.broadcast %cst_75 : f32 to vector<8x128xf32>
    %201 = arith.mulf %200, %199 : vector<8x128xf32>
    %202 = math.tanh %201 : vector<8x128xf32>
    %cst_76 = arith.constant 5.000000e-01 : f32
    %203 = vector.broadcast %cst_76 : f32 to vector<8x128xf32>
    %204 = arith.mulf %203, %202 : vector<8x128xf32>
    %cst_77 = arith.constant 5.000000e-01 : f32
    %205 = vector.broadcast %cst_77 : f32 to vector<8x128xf32>
    %206 = arith.addf %204, %205 : vector<8x128xf32>
    %207 = math.tanh %199 : vector<8x128xf32>
    %208 = vector.extract_strided_slice %206 {offsets = [0, 0], sizes = [8, 32], strides = [1, 1]} : vector<8x128xf32> to vector<8x32xf32>
    %209 = vector.extract_strided_slice %206 {offsets = [0, 32], sizes = [8, 32], strides = [1, 1]} : vector<8x128xf32> to vector<8x32xf32>
    %210 = vector.extract_strided_slice %207 {offsets = [0, 64], sizes = [8, 32], strides = [1, 1]} : vector<8x128xf32> to vector<8x32xf32>
    %211 = vector.extract_strided_slice %206 {offsets = [0, 96], sizes = [8, 32], strides = [1, 1]} : vector<8x128xf32> to vector<8x32xf32>
    %212 = arith.mulf %209, %184 : vector<8x32xf32>
    %213 = arith.mulf %208, %210 : vector<8x32xf32>
    %214 = arith.addf %212, %213 : vector<8x32xf32>
    %215 = math.tanh %214 : vector<8x32xf32>
    %216 = arith.mulf %211, %215 : vector<8x32xf32>
    %c0_i32_78 = arith.constant 0 : i32
    %217 = arith.addi %c0_i32_78, %c6_i32 : i32
    %c8_i32_79 = arith.constant 8 : i32
    %218 = arith.muli %217, %c8_i32_79 : i32
    %219 = tpu.assume_multiple %218, 8 : i32
    %220 = arith.index_cast %219 : i32 to index
    %c0_80 = arith.constant 0 : index
    %221 = vector.load %arg11[%220, %c0_80] : memref<64x32xf32, #tpu.memory_space<vmem>>, vector<8x32xf32>
    tpu.vector_store %arg11[%220, %c0_80], %216 {strides = array<i32>} : memref<64x32xf32, #tpu.memory_space<vmem>>, vector<8x32xf32>,
    %c7_i32 = arith.constant 7 : i32
    %c8_i32_81 = arith.constant 8 : i32
    %222 = arith.muli %c7_i32, %c8_i32_81 : i32
    %223 = tpu.assume_multiple %222, 8 : i32
    %c0_82 = arith.constant 0 : index
    %224 = arith.index_cast %223 : i32 to index
    %c0_83 = arith.constant 0 : index
    %225 = vector.load %arg10[%c0_82, %224, %c0_83] : memref<2x64x128xf32, #tpu.memory_space<vmem>>, vector<1x8x128xf32>
    %226 = vector.shape_cast %225 : vector<1x8x128xf32> to vector<8x128xf32>
    %227 = arith.truncf %216 : vector<8x32xf32> to vector<8x32xbf16>
    %cst_84 = arith.constant dense<0.000000e+00> : vector<8x128xf32>
    %228 = tpu.matmul %227, %1, %cst_84 {dimension_numbers = #tpu.dot_dimension_numbers<[1], [0], [0], [1], [0, 0, 1, 1], [], []>} : vector<8x32xbf16>, vector<32x128xbf16>, vector<8x128xf32> -> vector<8x128xf32>
    %229 = arith.addf %226, %228 : vector<8x128xf32>
    %cst_85 = arith.constant 5.000000e-01 : f32
    %230 = vector.broadcast %cst_85 : f32 to vector<8x128xf32>
    %231 = arith.mulf %230, %229 : vector<8x128xf32>
    %232 = math.tanh %231 : vector<8x128xf32>
    %cst_86 = arith.constant 5.000000e-01 : f32
    %233 = vector.broadcast %cst_86 : f32 to vector<8x128xf32>
    %234 = arith.mulf %233, %232 : vector<8x128xf32>
    %cst_87 = arith.constant 5.000000e-01 : f32
    %235 = vector.broadcast %cst_87 : f32 to vector<8x128xf32>
    %236 = arith.addf %234, %235 : vector<8x128xf32>
    %237 = math.tanh %229 : vector<8x128xf32>
    %238 = vector.extract_strided_slice %236 {offsets = [0, 0], sizes = [8, 32], strides = [1, 1]} : vector<8x128xf32> to vector<8x32xf32>
    %239 = vector.extract_strided_slice %236 {offsets = [0, 32], sizes = [8, 32], strides = [1, 1]} : vector<8x128xf32> to vector<8x32xf32>
    %240 = vector.extract_strided_slice %237 {offsets = [0, 64], sizes = [8, 32], strides = [1, 1]} : vector<8x128xf32> to vector<8x32xf32>
    %241 = vector.extract_strided_slice %236 {offsets = [0, 96], sizes = [8, 32], strides = [1, 1]} : vector<8x128xf32> to vector<8x32xf32>
    %242 = arith.mulf %239, %214 : vector<8x32xf32>
    %243 = arith.mulf %238, %240 : vector<8x32xf32>
    %244 = arith.addf %242, %243 : vector<8x32xf32>
    %245 = math.tanh %244 : vector<8x32xf32>
    %246 = arith.mulf %241, %245 : vector<8x32xf32>
    %c0_i32_88 = arith.constant 0 : i32
    %247 = arith.addi %c0_i32_88, %c7_i32 : i32
    %c8_i32_89 = arith.constant 8 : i32
    %248 = arith.muli %247, %c8_i32_89 : i32
    %249 = tpu.assume_multiple %248, 8 : i32
    %250 = arith.index_cast %249 : i32 to index
    %c0_90 = arith.constant 0 : index
    %251 = vector.load %arg11[%250, %c0_90] : memref<64x32xf32, #tpu.memory_space<vmem>>, vector<8x32xf32>
    tpu.vector_store %arg11[%250, %c0_90], %246 {strides = array<i32>} : memref<64x32xf32, #tpu.memory_space<vmem>>, vector<8x32xf32>,
    %c8_i32_91 = arith.constant 8 : i32
    %c0_92 = arith.constant 0 : index
    %c0_93 = arith.constant 0 : index
    %252 = vector.load %arg4[%c0_92, %c0_93] : memref<32x128xbf16, #tpu.memory_space<vmem>>, vector<32x128xbf16>
    %c0_94 = arith.constant 0 : index
    %c0_95 = arith.constant 0 : index
    %253 = vector.load %arg5[%c0_94, %c0_95] : memref<32x128xbf16, #tpu.memory_space<vmem>>, vector<32x128xbf16>
    %c0_96 = arith.constant 0 : index
    %c0_97 = arith.constant 0 : index
    %254 = vector.load %arg6[%c0_96, %c0_97] : memref<1x128xf32, #tpu.memory_space<vmem>>, vector<1x128xf32>
    %c0_98 = arith.constant 0 : index
    %c0_99 = arith.constant 0 : index
    %255 = vector.load %arg11[%c0_98, %c0_99] : memref<64x32xf32, #tpu.memory_space<vmem>>, vector<64x32xf32>
    %256 = arith.truncf %255 : vector<64x32xf32> to vector<64x32xbf16>
    %cst_100 = arith.constant dense<0.000000e+00> : vector<64x128xf32>
    %257 = tpu.matmul %256, %252, %cst_100 {dimension_numbers = #tpu.dot_dimension_numbers<[1], [0], [0], [1], [0, 0, 1, 1], [], []>} : vector<64x32xbf16>, vector<32x128xbf16>, vector<64x128xf32> -> vector<64x128xf32>
    %258 = vector.broadcast %254 : vector<1x128xf32> to vector<64x128xf32>
    %259 = arith.addf %257, %258 : vector<64x128xf32>
    %c0_101 = arith.constant 0 : index
    %c0_102 = arith.constant 0 : index
    %c0_103 = arith.constant 0 : index
    %260 = vector.load %arg10[%c0_101, %c0_102, %c0_103] : memref<2x64x128xf32, #tpu.memory_space<vmem>>, vector<1x64x128xf32>
    %261 = vector.shape_cast %260 : vector<1x64x128xf32> to vector<64x128xf32>
    %262 = vector.shape_cast %259 : vector<64x128xf32> to vector<1x64x128xf32>
    tpu.vector_store %arg10[%c0_101, %c0_102, %c0_103], %262 {strides = array<i32>} : memref<2x64x128xf32, #tpu.memory_space<vmem>>, vector<1x64x128xf32>,
    %cst_104 = arith.constant 0.000000e+00 : f32
    %263 = vector.broadcast %cst_104 : f32 to vector<8x32xf32>
    %cst_105 = arith.constant 0.000000e+00 : f32
    %264 = vector.broadcast %cst_105 : f32 to vector<8x32xf32>
    %c0_i32_106 = arith.constant 0 : i32
    %c8_i32_107 = arith.constant 8 : i32
    %265 = arith.muli %c0_i32_106, %c8_i32_107 : i32
    %266 = tpu.assume_multiple %265, 8 : i32
    %c0_108 = arith.constant 0 : index
    %267 = arith.index_cast %266 : i32 to index
    %c0_109 = arith.constant 0 : index
    %268 = vector.load %arg10[%c0_108, %267, %c0_109] : memref<2x64x128xf32, #tpu.memory_space<vmem>>, vector<1x8x128xf32>
    %269 = vector.shape_cast %268 : vector<1x8x128xf32> to vector<8x128xf32>
    %270 = arith.truncf %263 : vector<8x32xf32> to vector<8x32xbf16>
    %cst_110 = arith.constant dense<0.000000e+00> : vector<8x128xf32>
    %271 = tpu.matmul %270, %253, %cst_110 {dimension_numbers = #tpu.dot_dimension_numbers<[1], [0], [0], [1], [0, 0, 1, 1], [], []>} : vector<8x32xbf16>, vector<32x128xbf16>, vector<8x128xf32> -> vector<8x128xf32>
    %272 = arith.addf %269, %271 : vector<8x128xf32>
    %cst_111 = arith.constant 5.000000e-01 : f32
    %273 = vector.broadcast %cst_111 : f32 to vector<8x128xf32>
    %274 = arith.mulf %273, %272 : vector<8x128xf32>
    %275 = math.tanh %274 : vector<8x128xf32>
    %cst_112 = arith.constant 5.000000e-01 : f32
    %276 = vector.broadcast %cst_112 : f32 to vector<8x128xf32>
    %277 = arith.mulf %276, %275 : vector<8x128xf32>
    %cst_113 = arith.constant 5.000000e-01 : f32
    %278 = vector.broadcast %cst_113 : f32 to vector<8x128xf32>
    %279 = arith.addf %277, %278 : vector<8x128xf32>
    %280 = math.tanh %272 : vector<8x128xf32>
    %281 = vector.extract_strided_slice %279 {offsets = [0, 0], sizes = [8, 32], strides = [1, 1]} : vector<8x128xf32> to vector<8x32xf32>
    %282 = vector.extract_strided_slice %279 {offsets = [0, 32], sizes = [8, 32], strides = [1, 1]} : vector<8x128xf32> to vector<8x32xf32>
    %283 = vector.extract_strided_slice %280 {offsets = [0, 64], sizes = [8, 32], strides = [1, 1]} : vector<8x128xf32> to vector<8x32xf32>
    %284 = vector.extract_strided_slice %279 {offsets = [0, 96], sizes = [8, 32], strides = [1, 1]} : vector<8x128xf32> to vector<8x32xf32>
    %285 = arith.mulf %282, %264 : vector<8x32xf32>
    %286 = arith.mulf %281, %283 : vector<8x32xf32>
    %287 = arith.addf %285, %286 : vector<8x32xf32>
    %288 = math.tanh %287 : vector<8x32xf32>
    %289 = arith.mulf %284, %288 : vector<8x32xf32>
    %c1_i32_114 = arith.constant 1 : i32
    %c8_i32_115 = arith.constant 8 : i32
    %290 = arith.muli %c1_i32_114, %c8_i32_115 : i32
    %291 = tpu.assume_multiple %290, 8 : i32
    %c0_116 = arith.constant 0 : index
    %292 = arith.index_cast %291 : i32 to index
    %c0_117 = arith.constant 0 : index
    %293 = vector.load %arg10[%c0_116, %292, %c0_117] : memref<2x64x128xf32, #tpu.memory_space<vmem>>, vector<1x8x128xf32>
    %294 = vector.shape_cast %293 : vector<1x8x128xf32> to vector<8x128xf32>
    %295 = arith.truncf %289 : vector<8x32xf32> to vector<8x32xbf16>
    %cst_118 = arith.constant dense<0.000000e+00> : vector<8x128xf32>
    %296 = tpu.matmul %295, %253, %cst_118 {dimension_numbers = #tpu.dot_dimension_numbers<[1], [0], [0], [1], [0, 0, 1, 1], [], []>} : vector<8x32xbf16>, vector<32x128xbf16>, vector<8x128xf32> -> vector<8x128xf32>
    %297 = arith.addf %294, %296 : vector<8x128xf32>
    %cst_119 = arith.constant 5.000000e-01 : f32
    %298 = vector.broadcast %cst_119 : f32 to vector<8x128xf32>
    %299 = arith.mulf %298, %297 : vector<8x128xf32>
    %300 = math.tanh %299 : vector<8x128xf32>
    %cst_120 = arith.constant 5.000000e-01 : f32
    %301 = vector.broadcast %cst_120 : f32 to vector<8x128xf32>
    %302 = arith.mulf %301, %300 : vector<8x128xf32>
    %cst_121 = arith.constant 5.000000e-01 : f32
    %303 = vector.broadcast %cst_121 : f32 to vector<8x128xf32>
    %304 = arith.addf %302, %303 : vector<8x128xf32>
    %305 = math.tanh %297 : vector<8x128xf32>
    %306 = vector.extract_strided_slice %304 {offsets = [0, 0], sizes = [8, 32], strides = [1, 1]} : vector<8x128xf32> to vector<8x32xf32>
    %307 = vector.extract_strided_slice %304 {offsets = [0, 32], sizes = [8, 32], strides = [1, 1]} : vector<8x128xf32> to vector<8x32xf32>
    %308 = vector.extract_strided_slice %305 {offsets = [0, 64], sizes = [8, 32], strides = [1, 1]} : vector<8x128xf32> to vector<8x32xf32>
    %309 = vector.extract_strided_slice %304 {offsets = [0, 96], sizes = [8, 32], strides = [1, 1]} : vector<8x128xf32> to vector<8x32xf32>
    %310 = arith.mulf %307, %287 : vector<8x32xf32>
    %311 = arith.mulf %306, %308 : vector<8x32xf32>
    %312 = arith.addf %310, %311 : vector<8x32xf32>
    %313 = math.tanh %312 : vector<8x32xf32>
    %314 = arith.mulf %309, %313 : vector<8x32xf32>
    %c2_i32_122 = arith.constant 2 : i32
    %c8_i32_123 = arith.constant 8 : i32
    %315 = arith.muli %c2_i32_122, %c8_i32_123 : i32
    %316 = tpu.assume_multiple %315, 8 : i32
    %c0_124 = arith.constant 0 : index
    %317 = arith.index_cast %316 : i32 to index
    %c0_125 = arith.constant 0 : index
    %318 = vector.load %arg10[%c0_124, %317, %c0_125] : memref<2x64x128xf32, #tpu.memory_space<vmem>>, vector<1x8x128xf32>
    %319 = vector.shape_cast %318 : vector<1x8x128xf32> to vector<8x128xf32>
    %320 = arith.truncf %314 : vector<8x32xf32> to vector<8x32xbf16>
    %cst_126 = arith.constant dense<0.000000e+00> : vector<8x128xf32>
    %321 = tpu.matmul %320, %253, %cst_126 {dimension_numbers = #tpu.dot_dimension_numbers<[1], [0], [0], [1], [0, 0, 1, 1], [], []>} : vector<8x32xbf16>, vector<32x128xbf16>, vector<8x128xf32> -> vector<8x128xf32>
    %322 = arith.addf %319, %321 : vector<8x128xf32>
    %cst_127 = arith.constant 5.000000e-01 : f32
    %323 = vector.broadcast %cst_127 : f32 to vector<8x128xf32>
    %324 = arith.mulf %323, %322 : vector<8x128xf32>
    %325 = math.tanh %324 : vector<8x128xf32>
    %cst_128 = arith.constant 5.000000e-01 : f32
    %326 = vector.broadcast %cst_128 : f32 to vector<8x128xf32>
    %327 = arith.mulf %326, %325 : vector<8x128xf32>
    %cst_129 = arith.constant 5.000000e-01 : f32
    %328 = vector.broadcast %cst_129 : f32 to vector<8x128xf32>
    %329 = arith.addf %327, %328 : vector<8x128xf32>
    %330 = math.tanh %322 : vector<8x128xf32>
    %331 = vector.extract_strided_slice %329 {offsets = [0, 0], sizes = [8, 32], strides = [1, 1]} : vector<8x128xf32> to vector<8x32xf32>
    %332 = vector.extract_strided_slice %329 {offsets = [0, 32], sizes = [8, 32], strides = [1, 1]} : vector<8x128xf32> to vector<8x32xf32>
    %333 = vector.extract_strided_slice %330 {offsets = [0, 64], sizes = [8, 32], strides = [1, 1]} : vector<8x128xf32> to vector<8x32xf32>
    %334 = vector.extract_strided_slice %329 {offsets = [0, 96], sizes = [8, 32], strides = [1, 1]} : vector<8x128xf32> to vector<8x32xf32>
    %335 = arith.mulf %332, %312 : vector<8x32xf32>
    %336 = arith.mulf %331, %333 : vector<8x32xf32>
    %337 = arith.addf %335, %336 : vector<8x32xf32>
    %338 = math.tanh %337 : vector<8x32xf32>
    %339 = arith.mulf %334, %338 : vector<8x32xf32>
    %c3_i32_130 = arith.constant 3 : i32
    %c8_i32_131 = arith.constant 8 : i32
    %340 = arith.muli %c3_i32_130, %c8_i32_131 : i32
    %341 = tpu.assume_multiple %340, 8 : i32
    %c0_132 = arith.constant 0 : index
    %342 = arith.index_cast %341 : i32 to index
    %c0_133 = arith.constant 0 : index
    %343 = vector.load %arg10[%c0_132, %342, %c0_133] : memref<2x64x128xf32, #tpu.memory_space<vmem>>, vector<1x8x128xf32>
    %344 = vector.shape_cast %343 : vector<1x8x128xf32> to vector<8x128xf32>
    %345 = arith.truncf %339 : vector<8x32xf32> to vector<8x32xbf16>
    %cst_134 = arith.constant dense<0.000000e+00> : vector<8x128xf32>
    %346 = tpu.matmul %345, %253, %cst_134 {dimension_numbers = #tpu.dot_dimension_numbers<[1], [0], [0], [1], [0, 0, 1, 1], [], []>} : vector<8x32xbf16>, vector<32x128xbf16>, vector<8x128xf32> -> vector<8x128xf32>
    %347 = arith.addf %344, %346 : vector<8x128xf32>
    %cst_135 = arith.constant 5.000000e-01 : f32
    %348 = vector.broadcast %cst_135 : f32 to vector<8x128xf32>
    %349 = arith.mulf %348, %347 : vector<8x128xf32>
    %350 = math.tanh %349 : vector<8x128xf32>
    %cst_136 = arith.constant 5.000000e-01 : f32
    %351 = vector.broadcast %cst_136 : f32 to vector<8x128xf32>
    %352 = arith.mulf %351, %350 : vector<8x128xf32>
    %cst_137 = arith.constant 5.000000e-01 : f32
    %353 = vector.broadcast %cst_137 : f32 to vector<8x128xf32>
    %354 = arith.addf %352, %353 : vector<8x128xf32>
    %355 = math.tanh %347 : vector<8x128xf32>
    %356 = vector.extract_strided_slice %354 {offsets = [0, 0], sizes = [8, 32], strides = [1, 1]} : vector<8x128xf32> to vector<8x32xf32>
    %357 = vector.extract_strided_slice %354 {offsets = [0, 32], sizes = [8, 32], strides = [1, 1]} : vector<8x128xf32> to vector<8x32xf32>
    %358 = vector.extract_strided_slice %355 {offsets = [0, 64], sizes = [8, 32], strides = [1, 1]} : vector<8x128xf32> to vector<8x32xf32>
    %359 = vector.extract_strided_slice %354 {offsets = [0, 96], sizes = [8, 32], strides = [1, 1]} : vector<8x128xf32> to vector<8x32xf32>
    %360 = arith.mulf %357, %337 : vector<8x32xf32>
    %361 = arith.mulf %356, %358 : vector<8x32xf32>
    %362 = arith.addf %360, %361 : vector<8x32xf32>
    %363 = math.tanh %362 : vector<8x32xf32>
    %364 = arith.mulf %359, %363 : vector<8x32xf32>
    %c4_i32_138 = arith.constant 4 : i32
    %c8_i32_139 = arith.constant 8 : i32
    %365 = arith.muli %c4_i32_138, %c8_i32_139 : i32
    %366 = tpu.assume_multiple %365, 8 : i32
    %c0_140 = arith.constant 0 : index
    %367 = arith.index_cast %366 : i32 to index
    %c0_141 = arith.constant 0 : index
    %368 = vector.load %arg10[%c0_140, %367, %c0_141] : memref<2x64x128xf32, #tpu.memory_space<vmem>>, vector<1x8x128xf32>
    %369 = vector.shape_cast %368 : vector<1x8x128xf32> to vector<8x128xf32>
    %370 = arith.truncf %364 : vector<8x32xf32> to vector<8x32xbf16>
    %cst_142 = arith.constant dense<0.000000e+00> : vector<8x128xf32>
    %371 = tpu.matmul %370, %253, %cst_142 {dimension_numbers = #tpu.dot_dimension_numbers<[1], [0], [0], [1], [0, 0, 1, 1], [], []>} : vector<8x32xbf16>, vector<32x128xbf16>, vector<8x128xf32> -> vector<8x128xf32>
    %372 = arith.addf %369, %371 : vector<8x128xf32>
    %cst_143 = arith.constant 5.000000e-01 : f32
    %373 = vector.broadcast %cst_143 : f32 to vector<8x128xf32>
    %374 = arith.mulf %373, %372 : vector<8x128xf32>
    %375 = math.tanh %374 : vector<8x128xf32>
    %cst_144 = arith.constant 5.000000e-01 : f32
    %376 = vector.broadcast %cst_144 : f32 to vector<8x128xf32>
    %377 = arith.mulf %376, %375 : vector<8x128xf32>
    %cst_145 = arith.constant 5.000000e-01 : f32
    %378 = vector.broadcast %cst_145 : f32 to vector<8x128xf32>
    %379 = arith.addf %377, %378 : vector<8x128xf32>
    %380 = math.tanh %372 : vector<8x128xf32>
    %381 = vector.extract_strided_slice %379 {offsets = [0, 0], sizes = [8, 32], strides = [1, 1]} : vector<8x128xf32> to vector<8x32xf32>
    %382 = vector.extract_strided_slice %379 {offsets = [0, 32], sizes = [8, 32], strides = [1, 1]} : vector<8x128xf32> to vector<8x32xf32>
    %383 = vector.extract_strided_slice %380 {offsets = [0, 64], sizes = [8, 32], strides = [1, 1]} : vector<8x128xf32> to vector<8x32xf32>
    %384 = vector.extract_strided_slice %379 {offsets = [0, 96], sizes = [8, 32], strides = [1, 1]} : vector<8x128xf32> to vector<8x32xf32>
    %385 = arith.mulf %382, %362 : vector<8x32xf32>
    %386 = arith.mulf %381, %383 : vector<8x32xf32>
    %387 = arith.addf %385, %386 : vector<8x32xf32>
    %388 = math.tanh %387 : vector<8x32xf32>
    %389 = arith.mulf %384, %388 : vector<8x32xf32>
    %c5_i32_146 = arith.constant 5 : i32
    %c8_i32_147 = arith.constant 8 : i32
    %390 = arith.muli %c5_i32_146, %c8_i32_147 : i32
    %391 = tpu.assume_multiple %390, 8 : i32
    %c0_148 = arith.constant 0 : index
    %392 = arith.index_cast %391 : i32 to index
    %c0_149 = arith.constant 0 : index
    %393 = vector.load %arg10[%c0_148, %392, %c0_149] : memref<2x64x128xf32, #tpu.memory_space<vmem>>, vector<1x8x128xf32>
    %394 = vector.shape_cast %393 : vector<1x8x128xf32> to vector<8x128xf32>
    %395 = arith.truncf %389 : vector<8x32xf32> to vector<8x32xbf16>
    %cst_150 = arith.constant dense<0.000000e+00> : vector<8x128xf32>
    %396 = tpu.matmul %395, %253, %cst_150 {dimension_numbers = #tpu.dot_dimension_numbers<[1], [0], [0], [1], [0, 0, 1, 1], [], []>} : vector<8x32xbf16>, vector<32x128xbf16>, vector<8x128xf32> -> vector<8x128xf32>
    %397 = arith.addf %394, %396 : vector<8x128xf32>
    %cst_151 = arith.constant 5.000000e-01 : f32
    %398 = vector.broadcast %cst_151 : f32 to vector<8x128xf32>
    %399 = arith.mulf %398, %397 : vector<8x128xf32>
    %400 = math.tanh %399 : vector<8x128xf32>
    %cst_152 = arith.constant 5.000000e-01 : f32
    %401 = vector.broadcast %cst_152 : f32 to vector<8x128xf32>
    %402 = arith.mulf %401, %400 : vector<8x128xf32>
    %cst_153 = arith.constant 5.000000e-01 : f32
    %403 = vector.broadcast %cst_153 : f32 to vector<8x128xf32>
    %404 = arith.addf %402, %403 : vector<8x128xf32>
    %405 = math.tanh %397 : vector<8x128xf32>
    %406 = vector.extract_strided_slice %404 {offsets = [0, 0], sizes = [8, 32], strides = [1, 1]} : vector<8x128xf32> to vector<8x32xf32>
    %407 = vector.extract_strided_slice %404 {offsets = [0, 32], sizes = [8, 32], strides = [1, 1]} : vector<8x128xf32> to vector<8x32xf32>
    %408 = vector.extract_strided_slice %405 {offsets = [0, 64], sizes = [8, 32], strides = [1, 1]} : vector<8x128xf32> to vector<8x32xf32>
    %409 = vector.extract_strided_slice %404 {offsets = [0, 96], sizes = [8, 32], strides = [1, 1]} : vector<8x128xf32> to vector<8x32xf32>
    %410 = arith.mulf %407, %387 : vector<8x32xf32>
    %411 = arith.mulf %406, %408 : vector<8x32xf32>
    %412 = arith.addf %410, %411 : vector<8x32xf32>
    %413 = math.tanh %412 : vector<8x32xf32>
    %414 = arith.mulf %409, %413 : vector<8x32xf32>
    %c6_i32_154 = arith.constant 6 : i32
    %c8_i32_155 = arith.constant 8 : i32
    %415 = arith.muli %c6_i32_154, %c8_i32_155 : i32
    %416 = tpu.assume_multiple %415, 8 : i32
    %c0_156 = arith.constant 0 : index
    %417 = arith.index_cast %416 : i32 to index
    %c0_157 = arith.constant 0 : index
    %418 = vector.load %arg10[%c0_156, %417, %c0_157] : memref<2x64x128xf32, #tpu.memory_space<vmem>>, vector<1x8x128xf32>
    %419 = vector.shape_cast %418 : vector<1x8x128xf32> to vector<8x128xf32>
    %420 = arith.truncf %414 : vector<8x32xf32> to vector<8x32xbf16>
    %cst_158 = arith.constant dense<0.000000e+00> : vector<8x128xf32>
    %421 = tpu.matmul %420, %253, %cst_158 {dimension_numbers = #tpu.dot_dimension_numbers<[1], [0], [0], [1], [0, 0, 1, 1], [], []>} : vector<8x32xbf16>, vector<32x128xbf16>, vector<8x128xf32> -> vector<8x128xf32>
    %422 = arith.addf %419, %421 : vector<8x128xf32>
    %cst_159 = arith.constant 5.000000e-01 : f32
    %423 = vector.broadcast %cst_159 : f32 to vector<8x128xf32>
    %424 = arith.mulf %423, %422 : vector<8x128xf32>
    %425 = math.tanh %424 : vector<8x128xf32>
    %cst_160 = arith.constant 5.000000e-01 : f32
    %426 = vector.broadcast %cst_160 : f32 to vector<8x128xf32>
    %427 = arith.mulf %426, %425 : vector<8x128xf32>
    %cst_161 = arith.constant 5.000000e-01 : f32
    %428 = vector.broadcast %cst_161 : f32 to vector<8x128xf32>
    %429 = arith.addf %427, %428 : vector<8x128xf32>
    %430 = math.tanh %422 : vector<8x128xf32>
    %431 = vector.extract_strided_slice %429 {offsets = [0, 0], sizes = [8, 32], strides = [1, 1]} : vector<8x128xf32> to vector<8x32xf32>
    %432 = vector.extract_strided_slice %429 {offsets = [0, 32], sizes = [8, 32], strides = [1, 1]} : vector<8x128xf32> to vector<8x32xf32>
    %433 = vector.extract_strided_slice %430 {offsets = [0, 64], sizes = [8, 32], strides = [1, 1]} : vector<8x128xf32> to vector<8x32xf32>
    %434 = vector.extract_strided_slice %429 {offsets = [0, 96], sizes = [8, 32], strides = [1, 1]} : vector<8x128xf32> to vector<8x32xf32>
    %435 = arith.mulf %432, %412 : vector<8x32xf32>
    %436 = arith.mulf %431, %433 : vector<8x32xf32>
    %437 = arith.addf %435, %436 : vector<8x32xf32>
    %438 = math.tanh %437 : vector<8x32xf32>
    %439 = arith.mulf %434, %438 : vector<8x32xf32>
    %c7_i32_162 = arith.constant 7 : i32
    %c8_i32_163 = arith.constant 8 : i32
    %440 = arith.muli %c7_i32_162, %c8_i32_163 : i32
    %441 = tpu.assume_multiple %440, 8 : i32
    %c0_164 = arith.constant 0 : index
    %442 = arith.index_cast %441 : i32 to index
    %c0_165 = arith.constant 0 : index
    %443 = vector.load %arg10[%c0_164, %442, %c0_165] : memref<2x64x128xf32, #tpu.memory_space<vmem>>, vector<1x8x128xf32>
    %444 = vector.shape_cast %443 : vector<1x8x128xf32> to vector<8x128xf32>
    %445 = arith.truncf %439 : vector<8x32xf32> to vector<8x32xbf16>
    %cst_166 = arith.constant dense<0.000000e+00> : vector<8x128xf32>
    %446 = tpu.matmul %445, %253, %cst_166 {dimension_numbers = #tpu.dot_dimension_numbers<[1], [0], [0], [1], [0, 0, 1, 1], [], []>} : vector<8x32xbf16>, vector<32x128xbf16>, vector<8x128xf32> -> vector<8x128xf32>
    %447 = arith.addf %444, %446 : vector<8x128xf32>
    %cst_167 = arith.constant 5.000000e-01 : f32
    %448 = vector.broadcast %cst_167 : f32 to vector<8x128xf32>
    %449 = arith.mulf %448, %447 : vector<8x128xf32>
    %450 = math.tanh %449 : vector<8x128xf32>
    %cst_168 = arith.constant 5.000000e-01 : f32
    %451 = vector.broadcast %cst_168 : f32 to vector<8x128xf32>
    %452 = arith.mulf %451, %450 : vector<8x128xf32>
    %cst_169 = arith.constant 5.000000e-01 : f32
    %453 = vector.broadcast %cst_169 : f32 to vector<8x128xf32>
    %454 = arith.addf %452, %453 : vector<8x128xf32>
    %455 = math.tanh %447 : vector<8x128xf32>
    %456 = vector.extract_strided_slice %454 {offsets = [0, 0], sizes = [8, 32], strides = [1, 1]} : vector<8x128xf32> to vector<8x32xf32>
    %457 = vector.extract_strided_slice %454 {offsets = [0, 32], sizes = [8, 32], strides = [1, 1]} : vector<8x128xf32> to vector<8x32xf32>
    %458 = vector.extract_strided_slice %455 {offsets = [0, 64], sizes = [8, 32], strides = [1, 1]} : vector<8x128xf32> to vector<8x32xf32>
    %459 = vector.extract_strided_slice %454 {offsets = [0, 96], sizes = [8, 32], strides = [1, 1]} : vector<8x128xf32> to vector<8x32xf32>
    %460 = arith.mulf %457, %437 : vector<8x32xf32>
    %461 = arith.mulf %456, %458 : vector<8x32xf32>
    %462 = arith.addf %460, %461 : vector<8x32xf32>
    %463 = math.tanh %462 : vector<8x32xf32>
    %464 = arith.mulf %459, %463 : vector<8x32xf32>
    %c8_i32_170 = arith.constant 8 : i32
    %465 = arith.truncf %464 : vector<8x32xf32> to vector<8x32xbf16>
    %c0_171 = arith.constant 0 : index
    %c0_172 = arith.constant 0 : index
    %466 = vector.load %arg7[%c0_171, %c0_172] : memref<32x128xbf16, #tpu.memory_space<vmem>>, vector<32x128xbf16>
    %cst_173 = arith.constant dense<0.000000e+00> : vector<8x128xf32>
    %467 = tpu.matmul %465, %466, %cst_173 {dimension_numbers = #tpu.dot_dimension_numbers<[1], [0], [0], [1], [0, 0, 1, 1], [], []>} : vector<8x32xbf16>, vector<32x128xbf16>, vector<8x128xf32> -> vector<8x128xf32>
    %c0_174 = arith.constant 0 : index
    %c0_175 = arith.constant 0 : index
    %468 = vector.load %arg8[%c0_174, %c0_175] : memref<1x128xf32, #tpu.memory_space<vmem>>, vector<1x128xf32>
    %469 = vector.broadcast %468 : vector<1x128xf32> to vector<8x128xf32>
    %470 = arith.addf %467, %469 : vector<8x128xf32>
    %c0_176 = arith.constant 0 : index
    %c0_177 = arith.constant 0 : index
    %471 = vector.load %arg9[%c0_176, %c0_177] : memref<8x128xf32, #tpu.memory_space<vmem>>, vector<8x128xf32>
    tpu.vector_store %arg9[%c0_176, %c0_177], %470 {strides = array<i32>} : memref<8x128xf32, #tpu.memory_space<vmem>>, vector<8x128xf32>,
    return
  }
}

</mosaic_0001>

<bundles_post_ra>
// kernel: my_lstm_forward.1
= control target key start
LH: loop header
LB: loop body
LE: loop exit
PB: predicated region body
PF: predicated region fallthrough
CT: control target
= control target key end

     0   :  { %s1572_s0 = inlined_call_operand.vmem [shape: bf16[64,32], index: 0, kind: input, shape index: {}]   ;;  %s1573_s1 = inlined_call_operand.vmem [shape: bf16[32,128], index: 1, kind: input, shape index: {}]   ;;  %s1574_s2 = inlined_call_operand.vmem [shape: bf16[32,128], index: 2, kind: input, shape index: {}]   ;;  %s1575_s3 = inlined_call_operand.vmem [shape: f32[1,128], index: 3, kind: input, shape index: {}]   ;;  %s1576_s4 = inlined_call_operand.vmem [shape: bf16[32,128], index: 4, kind: input, shape index: {}]   ;;  %s1577_s5 = inlined_call_operand.vmem [shape: bf16[32,128], index: 5, kind: input, shape index: {}]   ;;  %s1578_s6 = inlined_call_operand.vmem [shape: f32[1,128], index: 6, kind: input, shape index: {}]   ;;  %s1579_s7 = inlined_call_operand.vmem [shape: bf16[32,128], index: 7, kind: input, shape index: {}]   ;;  %s1580_s8 = inlined_call_operand.vmem [shape: f32[1,128], index: 8, kind: input, shape index: {}]   ;;  %s1581_s9 = inlined_call_operand.hbm [shape: f32[8,128], index: 9, kind: output, shape index: {}]  }
   0x1   :  { %v1129_v0 = vld [vmem:[%s1573_s1 + $0x8] sm:$0xff]  ;;  %v1128_v2 = vld [vmem:[%s1573_s1] sm:$0xff] }
   0x2   :  { %v1131_v1 = vld [vmem:[%s1574_s2 + $0x8] sm:$0xff]  ;;  %105 = vmatpush.bf16.msra.mxu0 %v1129_v0  ;;  %v1130_v3 = vld [vmem:[%s1574_s2] sm:$0xff] }
   0x3   :  { %158 = vmatpush.bf16.msra.mxu1 %v1131_v1  ;;  %208 = vmatpush.bf16.msra.mxu2 %v1131_v1 }
   0x4   :  { %259 = vmatpush.bf16.msra.mxu3 %v1131_v1 }
   0x5   :  { %14 = vsyncpa [#allocation5], 0  ;;  %v1132_v4 = vld [vmem:[%s1572_s0] sm:$0xff]  ;;  %vm86_vm0 = vcmask 261120   ;;  %v1271_v5 = vmov 0   ;;  %s1272_s19 = smov 64  }
   0x6   :  { %106 = vmatpush.bf16.msra.mxu0 %v1128_v2  ;;  %v1345_v6 = vld [vmem:[%s1575_s3] ss:$0 sm:$0xff]  ;;  %s1273_s3 = smov 32   ;;  %v1133_v43 = vld [vmem:[%s1572_s0 + $0x8] sm:$0xff]  ;;  %s1274_s17 = smov [#allocation4]  }
   0x7   :  { %159 = vmatpush.bf16.msra.mxu1 %v1130_v3  ;;  %209 = vmatpush.bf16.msra.mxu2 %v1130_v3  ;;  %s1038_s18 = sshll.u32 %s1274_s17, 4  ;;  %s1039_s18 = int_to_ptr.vmem [resolvable:$true] %s1038_s18 }
   0x8   :  { %260 = vmatpush.bf16.msra.mxu3 %v1130_v3 }
   0x9   :  { %1073 = vmatmul.msk.bf16.vlgmr.msra.gmra.mxu0 %vm86_vm0, %v1132_v4 }
   0xa   :  { %160 = vmatmul.bf16.vlgmr.msra.gmra.mxu1 %v1271_v5 }
   0xb   :  { %310 = vmatpush.bf16.msrb.mxu1 %v1131_v1  ;;  %361 = vmatpush.bf16.msrb.mxu2 %v1131_v1 }
   0xc   :  { %412 = vmatpush.bf16.msrb.mxu3 %v1131_v1 }
   0xf   :  { %311 = vmatpush.bf16.msrb.mxu1 %v1130_v3  ;;  %362 = vmatpush.bf16.msrb.mxu2 %v1130_v3 }
  0x10   :  { %413 = vmatpush.bf16.msrb.mxu3 %v1130_v3 }
  0x13   :  { %463 = vmatpush.bf16.msra.mxu1 %v1131_v1 }
  0x17   :  { %464 = vmatpush.bf16.msra.mxu1 %v1130_v3 }
  0x19   :  { %1074 = vmatmul.msk.bf16.gmra.mxu0 %vm86_vm0, %v1133_v43 }
  0x86   :  { %v108_v7 = vpop.f32.mrf.mxu0 }
  0x87   :  { %v161_v8 = vpop.f32.mrf.mxu1  ;;  %v109_v9 = vadd.f32 %v1345_v6, %v108_v7 }
  0x89   :  { %v165_v10 = vadd.f32 %v161_v8, %v109_v9 }
  0x8b   :  { %1149 = vtanh.f32 %v165_v10  ;;  %v166_v13 = vmul.f32 0.5, %v165_v10 }
  0x8d   :  { %1151 = vtanh.f32 %v166_v13 }
  0x8e   :  { %v110_v27 = vpop.f32.mrf.mxu0 }
  0x8f   :  { %v163_v11 = vpop.f32.mrf.mxu1  ;;  %v111_v28 = vadd.f32 %v1345_v6, %v110_v27 }
  0x91   :  { %v1150_v12 = vpop.eup %1149 }
  0x92   :  { %173 = vrot.lane.b32.xlu0 %v1150_v12, %s1272_s19 }
  0x93   :  { %v1152_v14 = vpop.eup %1151 }
  0x94   :  { %v168_v15 = vmul.f32 0.5, %v1152_v14 }
  0x96   :  { %v169_v16 = vadd.f32 0.5, %v168_v15  ;;  %v113_v48 = vpop.f32.mrf.mxu0 }
  0x97   :  { %v114_v49 = vadd.f32 %v1345_v6, %v113_v48 }
  0x98   :  { %v171_v19 = vmul.f32 0.0, %v169_v16 }
  0x9e   :  { %v115_v4 = vpop.f32.mrf.mxu0 }
  0x9f   :  { %v116_v7 = vadd.f32 %v1345_v6, %v115_v4 }
 0x104   :  { %v174_v17 = vpop.permute.xlu0 %173 }
 0x105   :  { %v176_v18 = vmul.f32 %v174_v17, %v169_v16 }
 0x107   :  { %178 = vrot.lane.b32.xlu0 %v176_v18, %s1273_s3 }
 0x179   :  { %v179_v20 = vpop.permute.xlu0 %178 }
 0x17a   :  { %v181_v21 = vadd.f32 %v179_v20, %v171_v19 }
 0x17c   :  { %1153 = vtanh.f32 %v181_v21 }
 0x182   :  { %v1154_v22 = vpop.eup %1153 }
 0x183   :  { %184 = vrot.lane.b32.xlu1 %v1154_v22, %s1272_s19  ;;  %v1134_v22 = vld [vmem:[%s1572_s0 + $0x10] sm:$0xff] }
 0x184   :  { %1075 = vmatmul.msk.bf16.gmra.mxu0 %vm86_vm0, %v1134_v22  ;;  %v1463_v22 = vld [vmem:[%s1578_s6] ss:$0 sm:$0xff] }
 0x1f5   :  { %v185_v23 = vpop.permute.xlu1 %184 }
 0x1f6   :  { %v1351_v24 = vmul.f32 %v185_v23, %v169_v16 }
 0x1f8   :  { %v195_v25 = vpack.c.bf16 %v1351_v24, %v1351_v24 }
 0x1fa   :  { %197 = vrot.lane.b32.xlu1 %v195_v25, %s1273_s3 }
 0x26c   :  { %v198_v26 = vpop.permute.xlu1 %197 }
 0x26d   :  { %1085 = vmatmul.msk.bf16.vlgmr.msra.gmra.mxu2 %vm86_vm0, %v198_v26 }
 0x26e   :  { %514 = vmatpush.bf16.msra.mxu2 %v1131_v1 }
 0x272   :  { %515 = vmatpush.bf16.msra.mxu2 %v1130_v3 }
 0x2f0   :  { %v211_v29 = vpop.f32.mrf.mxu2 }
 0x2f1   :  { %v215_v30 = vadd.f32 %v211_v29, %v111_v28  ;;  %v118_v28 = vpop.f32.mrf.mxu0 }
 0x2f2   :  { %v119_v29 = vadd.f32 %v1345_v6, %v118_v28 }
 0x2f3   :  { %1155 = vtanh.f32 %v215_v30  ;;  %v216_v33 = vmul.f32 0.5, %v215_v30 }
 0x2f5   :  { %1157 = vtanh.f32 %v216_v33 }
 0x2f8   :  { %v213_v31 = vpop.f32.mrf.mxu2 }
 0x2f9   :  { %v1156_v32 = vpop.eup %1155 }
 0x2fa   :  { %223 = vrot.lane.b32.xlu2 %v1156_v32, %s1272_s19 }
 0x2fb   :  { %v1158_v34 = vpop.eup %1157 }
 0x2fc   :  { %v218_v35 = vmul.f32 0.5, %v1158_v34 }
 0x2fe   :  { %v219_v36 = vadd.f32 0.5, %v218_v35 }
 0x300   :  { %v221_v39 = vmul.f32 %v219_v36, %v181_v21 }
 0x354   :  { %v224_v37 = vpop.permute.xlu2 %223 }
 0x355   :  { %v226_v38 = vmul.f32 %v224_v37, %v219_v36 }
 0x357   :  { %228 = vrot.lane.b32.xlu2 %v226_v38, %s1273_s3 }
 0x3b1   :  { %v229_v40 = vpop.permute.xlu2 %228 }
 0x3b2   :  { %v231_v41 = vadd.f32 %v229_v40, %v221_v39 }
 0x3b4   :  { %1159 = vtanh.f32 %v231_v41 }
 0x3ba   :  { %v1160_v42 = vpop.eup %1159 }
 0x3bb   :  { %234 = vrot.lane.b32.xlu0 %v1160_v42, %s1272_s19 }
 0x42d   :  { %v235_v44 = vpop.permute.xlu0 %234 }
 0x42e   :  { %v1365_v45 = vmul.f32 %v235_v44, %v219_v36 }
 0x430   :  { %v246_v46 = vpack.c.bf16 %v1365_v45, %v1365_v45 }
 0x432   :  { %248 = vrot.lane.b32.xlu1 %v246_v46, %s1273_s3 }
 0x4a4   :  { %v249_v47 = vpop.permute.xlu1 %248 }
 0x4a5   :  { %1086 = vmatmul.msk.bf16.vlgmr.msra.gmra.mxu3 %vm86_vm0, %v249_v47 }
 0x528   :  { %v262_v50 = vpop.f32.mrf.mxu3 }
 0x529   :  { %v266_v51 = vadd.f32 %v262_v50, %v114_v49  ;;  %v120_v49 = vpop.f32.mrf.mxu0 }
 0x52a   :  { %v121_v50 = vadd.f32 %v1345_v6, %v120_v49 }
 0x52b   :  { %1161 = vtanh.f32 %v266_v51  ;;  %v267_v54 = vmul.f32 0.5, %v266_v51 }
 0x52d   :  { %1163 = vtanh.f32 %v267_v54 }
 0x530   :  { %v264_v52 = vpop.f32.mrf.mxu3 }
 0x531   :  { %v1162_v53 = vpop.eup %1161 }
 0x532   :  { %274 = vrot.lane.b32.xlu2 %v1162_v53, %s1272_s19 }
 0x533   :  { %v1164_v55 = vpop.eup %1163 }
 0x534   :  { %v269_v56 = vmul.f32 0.5, %v1164_v55 }
 0x536   :  { %v270_v57 = vadd.f32 0.5, %v269_v56 }
 0x538   :  { %v272_v60 = vmul.f32 %v270_v57, %v231_v41 }
 0x58c   :  { %v275_v58 = vpop.permute.xlu2 %274 }
 0x58d   :  { %v277_v59 = vmul.f32 %v275_v58, %v270_v57 }
 0x58f   :  { %279 = vrot.lane.b32.xlu0 %v277_v59, %s1273_s3 }
 0x601   :  { %v280_v61 = vpop.permute.xlu0 %279 }
 0x602   :  { %v282_v62 = vadd.f32 %v280_v61, %v272_v60 }
 0x604   :  { %1165 = vtanh.f32 %v282_v62 }
 0x60a   :  { %v1166_v63 = vpop.eup %1165 }
 0x60b   :  { %285 = vrot.lane.b32.xlu1 %v1166_v63, %s1272_s19 }
 0x67d   :  { %v286_v0 = vpop.permute.xlu1 %285 }
 0x67e   :  { %v1375_v1 = vmul.f32 %v286_v0, %v270_v57 }
 0x680   :  { %v297_v2 = vpack.c.bf16 %v1375_v1, %v1375_v1 }
 0x682   :  { %299 = vrot.lane.b32.xlu2 %v297_v2, %s1273_s3 }
 0x6dc   :  { %v300_v3 = vpop.permute.xlu2 %299 }
 0x6dd   :  { %1087 = vmatmul.msk.bf16.vlgmr.msrb.gmra.mxu1 %vm86_vm0, %v300_v3 }
 0x75a   :  { %v313_v8 = vpop.f32.mrf.mxu1 }
 0x75b   :  { %v317_v9 = vadd.f32 %v313_v8, %v116_v7 }
 0x75d   :  { %1167 = vtanh.f32 %v317_v9  ;;  %v318_v12 = vmul.f32 0.5, %v317_v9 }
 0x75f   :  { %1169 = vtanh.f32 %v318_v12  ;;  %v1135_v12 = vld [vmem:[%s1572_s0 + $0x18] sm:$0xff] }
 0x760   :  { %1076 = vmatmul.msk.bf16.gmra.mxu0 %vm86_vm0, %v1135_v12 }
 0x762   :  { %v315_v10 = vpop.f32.mrf.mxu1 }
 0x763   :  { %v1168_v11 = vpop.eup %1167 }
 0x764   :  { %325 = vrot.lane.b32.xlu0 %v1168_v11, %s1272_s19 }
 0x765   :  { %v1170_v13 = vpop.eup %1169 }
 0x766   :  { %v320_v14 = vmul.f32 0.5, %v1170_v13  ;;  %v1437_v13 = vld [vmem:[%s1577_s5 + $0x8] sm:$0xff] }
 0x767   :  { %654 = vmatpush.bf16.msrb.mxu1 %v1437_v13  ;;  %742 = vmatpush.bf16.msrb.mxu0 %v1437_v13 }
 0x768   :  { %v321_v15 = vadd.f32 0.5, %v320_v14  ;;  %v1443_v14 = vld [vmem:[%s1577_s5] sm:$0xff] }
 0x76a   :  { %v323_v18 = vmul.f32 %v321_v15, %v282_v62  ;;  %v1137_v62 = vld [vmem:[%s1576_s4 + $0x8] sm:$0xff] }
 0x76b   :  { %604 = vmatpush.bf16.msra.mxu3 %v1137_v62  ;;  %655 = vmatpush.bf16.msrb.mxu1 %v1443_v14 }
 0x76c   :  { %743 = vmatpush.bf16.msrb.mxu0 %v1443_v14 }
 0x770   :  { %874 = vmatpush.bf16.msra.mxu0 %v1437_v13 }
 0x774   :  { %875 = vmatpush.bf16.msra.mxu0 %v1443_v14 }
 0x7d6   :  { %v326_v16 = vpop.permute.xlu0 %325 }
 0x7d7   :  { %v328_v17 = vmul.f32 %v326_v16, %v321_v15 }
 0x7d9   :  { %330 = vrot.lane.b32.xlu1 %v328_v17, %s1273_s3 }
 0x7dd   :  { %v123_v16 = vpop.f32.mrf.mxu0 }
 0x7de   :  { %v124_v17 = vadd.f32 %v1345_v6, %v123_v16 }
 0x84b   :  { %v331_v19 = vpop.permute.xlu1 %330 }
 0x84c   :  { %v333_v20 = vadd.f32 %v331_v19, %v323_v18 }
 0x84e   :  { %1171 = vtanh.f32 %v333_v20 }
 0x854   :  { %v1172_v21 = vpop.eup %1171 }
 0x855   :  { %336 = vrot.lane.b32.xlu2 %v1172_v21, %s1272_s19 }
 0x8af   :  { %v337_v23 = vpop.permute.xlu2 %336 }
 0x8b0   :  { %v1389_v25 = vmul.f32 %v337_v23, %v321_v15 }
 0x8b2   :  { %v348_v26 = vpack.c.bf16 %v1389_v25, %v1389_v25 }
 0x8b4   :  { %350 = vrot.lane.b32.xlu0 %v348_v26, %s1273_s3 }
 0x926   :  { %v351_v27 = vpop.permute.xlu0 %350 }
 0x927   :  { %1088 = vmatmul.msk.bf16.vlgmr.msrb.gmra.mxu2 %vm86_vm0, %v351_v27 }
 0x928   :  { %698 = vmatpush.bf16.msrb.mxu2 %v1437_v13 }
 0x92c   :  { %699 = vmatpush.bf16.msrb.mxu2 %v1443_v14 }
 0x9aa   :  { %v364_v30 = vpop.f32.mrf.mxu2 }
 0x9ab   :  { %v368_v31 = vadd.f32 %v364_v30, %v119_v29 }
 0x9ad   :  { %1173 = vtanh.f32 %v368_v31  ;;  %v369_v34 = vmul.f32 0.5, %v368_v31 }
 0x9af   :  { %1175 = vtanh.f32 %v369_v34 }
 0x9b2   :  { %v366_v32 = vpop.f32.mrf.mxu2 }
 0x9b3   :  { %v1174_v33 = vpop.eup %1173 }
 0x9b4   :  { %376 = vrot.lane.b32.xlu1 %v1174_v33, %s1272_s19 }
 0x9b5   :  { %v1176_v35 = vpop.eup %1175 }
 0x9b6   :  { %v371_v36 = vmul.f32 0.5, %v1176_v35 }
 0x9b8   :  { %v372_v37 = vadd.f32 0.5, %v371_v36 }
 0x9ba   :  { %v374_v40 = vmul.f32 %v372_v37, %v333_v20 }
 0xa26   :  { %v377_v38 = vpop.permute.xlu1 %376 }
 0xa27   :  { %v379_v39 = vmul.f32 %v377_v38, %v372_v37 }
 0xa29   :  { %381 = vrot.lane.b32.xlu2 %v379_v39, %s1273_s3 }
 0xa83   :  { %v382_v41 = vpop.permute.xlu2 %381 }
 0xa84   :  { %v384_v42 = vadd.f32 %v382_v41, %v374_v40 }
 0xa86   :  { %1177 = vtanh.f32 %v384_v42 }
 0xa8c   :  { %v1178_v43 = vpop.eup %1177 }
 0xa8d   :  { %387 = vrot.lane.b32.xlu0 %v1178_v43, %s1272_s19 }
 0xaff   :  { %v388_v44 = vpop.permute.xlu0 %387 }
 0xb00   :  { %v1399_v46 = vmul.f32 %v388_v44, %v372_v37 }
 0xb02   :  { %v399_v47 = vpack.c.bf16 %v1399_v46, %v1399_v46 }
 0xb04   :  { %401 = vrot.lane.b32.xlu1 %v399_v47, %s1273_s3 }
 0xb76   :  { %v402_v48 = vpop.permute.xlu1 %401 }
 0xb77   :  { %1089 = vmatmul.msk.bf16.vlgmr.msrb.gmra.mxu3 %vm86_vm0, %v402_v48 }
 0xbfa   :  { %v415_v51 = vpop.f32.mrf.mxu3 }
 0xbfb   :  { %v419_v52 = vadd.f32 %v415_v51, %v121_v50 }
 0xbfd   :  { %1179 = vtanh.f32 %v419_v52  ;;  %v420_v55 = vmul.f32 0.5, %v419_v52 }
 0xbff   :  { %1181 = vtanh.f32 %v420_v55 }
 0xc02   :  { %v417_v53 = vpop.f32.mrf.mxu3 }
 0xc03   :  { %v1180_v54 = vpop.eup %1179 }
 0xc04   :  { %427 = vrot.lane.b32.xlu2 %v1180_v54, %s1272_s19 }
 0xc05   :  { %v1182_v56 = vpop.eup %1181 }
 0xc06   :  { %v422_v57 = vmul.f32 0.5, %v1182_v56 }
 0xc08   :  { %v423_v58 = vadd.f32 0.5, %v422_v57 }
 0xc0a   :  { %v425_v63 = vmul.f32 %v423_v58, %v384_v42 }
 0xc0c   :  { %189 = vrot.lane.b32.xlu2 %v1351_v24, %s1273_s3  ;;  %v1136_v24 = vld [vmem:[%s1576_s4] sm:$0xff] }
 0xc0d   :  { %605 = vmatpush.bf16.msra.mxu3 %v1136_v24 }
 0xc5e   :  { %v428_v59 = vpop.permute.xlu2 %427 }
 0xc5f   :  { %v430_v60 = vmul.f32 %v428_v59, %v423_v58 }
 0xc61   :  { %432 = vrot.lane.b32.xlu0 %v430_v60, %s1273_s3 }
 0xc66   :  { %v190_v61 = vpop.permute.xlu2 %189 }
 0xc67   :  { %192 = vst.msk [vmem:[#allocation3] sm:$0xff] %vm86_vm0, %v190_v61 }
 0xc69   :  { %239 = vrot.lane.b32.xlu0 %v1365_v45, %s1273_s3 }
 0xc6e   :  { %v559_v45 = vld [vmem:[#allocation3] sm:$0xff] }
 0xcd3   :  { %v433_v0 = vpop.permute.xlu0 %432 }
 0xcd4   :  { %v1419_v2 = vadd.f32 %v433_v0, %v425_v63 }
 0xcd6   :  { %1183 = vtanh.f32 %v1419_v2 }
 0xcdb   :  { %v240_v3 = vpop.permute.xlu0 %239 }
 0xcdc   :  { %v1184_v4 = vpop.eup %1183  ;;  %243 = vst.msk [vmem:[#allocation3 + $0x8] sm:$0xff] %vm86_vm0, %v240_v3 }
 0xcdd   :  { %438 = vrot.lane.b32.xlu1 %v1184_v4, %s1272_s19 }
 0xce3   :  { %v560_v7 = vld [vmem:[#allocation3 + $0x8] sm:$0xff] }
 0xce4   :  { %v567_v8 = vpack.c.bf16 %v560_v7, %v559_v45 }
 0xce6   :  { %1100 = vmatmul.msk.bf16.vlgmr.msra.gmra.mxu3 %vm86_vm0, %v567_v8 }
 0xd4f   :  { %v439_v9 = vpop.permute.xlu1 %438 }
 0xd50   :  { %v1425_v10 = vmul.f32 %v439_v9, %v423_v58 }
 0xd52   :  { %v450_v11 = vpack.c.bf16 %v1425_v10, %v1425_v10 }
 0xd54   :  { %452 = vrot.lane.b32.xlu1 %v450_v11, %s1273_s3 }
 0xdc6   :  { %v453_v15 = vpop.permute.xlu1 %452 }
 0xdc7   :  { %1090 = vmatmul.msk.bf16.vlgmr.msra.gmra.mxu1 %vm86_vm0, %v453_v15 }
 0xdc8   :  { %786 = vmatpush.bf16.msra.mxu1 %v1437_v13 }
 0xdcc   :  { %787 = vmatpush.bf16.msra.mxu1 %v1443_v14 }
 0xdd7   :  { %656 = vmatmul.bf16.vlgmr.msrb.gmra.mxu1 %v1271_v5  ;;  %v607_v5 = vpop.f32.mrf.mxu3 }
 0xdd8   :  { %918 = vmatpush.bf16.msrb.mxu1 %v1437_v13  ;;  %v608_v23 = vadd.f32 %v1463_v22, %v607_v5 }
 0xddc   :  { %919 = vmatpush.bf16.msrb.mxu1 %v1443_v14 }
 0xddf   :  { %v609_v62 = vpop.f32.mrf.mxu3 }
 0xde0   :  { %v610_v24 = vadd.f32 %v1463_v22, %v609_v62 }
 0xe44   :  { %v466_v18 = vpop.f32.mrf.mxu1 }
 0xe45   :  { %v470_v19 = vadd.f32 %v466_v18, %v124_v17 }
 0xe47   :  { %1185 = vtanh.f32 %v470_v19  ;;  %v471_v30 = vmul.f32 0.5, %v470_v19 }
 0xe4c   :  { %v468_v20 = vpop.f32.mrf.mxu1 }
 0xe4d   :  { %v1186_v21 = vpop.eup %1185 }
 0xe4e   :  { %478 = vrot.lane.b32.xlu2 %v1186_v21, %s1272_s19 }
 0xe54   :  { %v657_v26 = vpop.f32.mrf.mxu1 }
 0xe55   :  { %v661_v27 = vadd.f32 %v657_v26, %v608_v23  ;;  %v1502_v23 = vpop.f32.mrf.mxu0 }
 0xe57   :  { %1187 = vtanh.f32 %v661_v27  ;;  %v662_v36 = vmul.f32 0.5, %v661_v27 }
 0xe58   :  { %1189 = vtanh.f32 %v471_v30 }
 0xe59   :  { %1191 = vtanh.f32 %v662_v36 }
 0xe5c   :  { %v659_v28 = vpop.f32.mrf.mxu1 }
 0xe5d   :  { %v1188_v29 = vpop.eup %1187 }
 0xe5e   :  { %669 = vrot.lane.b32.xlu0 %v1188_v29, %s1272_s19  ;;  %v1190_v31 = vpop.eup %1189 }
 0xe5f   :  { %v473_v32 = vmul.f32 0.5, %v1190_v31  ;;  %v1192_v37 = vpop.eup %1191 }
 0xe60   :  { %v664_v38 = vmul.f32 0.5, %v1192_v37 }
 0xe61   :  { %v474_v33 = vadd.f32 0.5, %v473_v32 }
 0xe62   :  { %v665_v39 = vadd.f32 0.5, %v664_v38 }
 0xe63   :  { %v476_v42 = vmul.f32 %v474_v33, %v1419_v2 }
 0xe64   :  { %v667_v48 = vmul.f32 0.0, %v665_v39 }
 0xea8   :  { %v479_v34 = vpop.permute.xlu2 %478 }
 0xea9   :  { %v481_v35 = vmul.f32 %v479_v34, %v474_v33 }
 0xeab   :  { %483 = vrot.lane.b32.xlu1 %v481_v35, %s1273_s3 }
 0xed0   :  { %v670_v40 = vpop.permute.xlu0 %669 }
 0xed1   :  { %v672_v41 = vmul.f32 %v670_v40, %v665_v39 }
 0xed3   :  { %674 = vrot.lane.b32.xlu2 %v672_v41, %s1273_s3 }
 0xf1d   :  { %v484_v43 = vpop.permute.xlu1 %483 }
 0xf1e   :  { %v1470_v44 = vadd.f32 %v484_v43, %v476_v42 }
 0xf20   :  { %1193 = vtanh.f32 %v1470_v44 }
 0xf26   :  { %v1194_v47 = vpop.eup %1193 }
 0xf27   :  { %489 = vrot.lane.b32.xlu0 %v1194_v47, %s1272_s19 }
 0xf2d   :  { %v675_v49 = vpop.permute.xlu2 %674 }
 0xf2e   :  { %v677_v50 = vadd.f32 %v675_v49, %v667_v48 }
 0xf30   :  { %1195 = vtanh.f32 %v677_v50 }
 0xf36   :  { %v1196_v51 = vpop.eup %1195 }
 0xf37   :  { %680 = vrot.lane.b32.xlu1 %v1196_v51, %s1272_s19 }
 0xf99   :  { %v490_v52 = vpop.permute.xlu0 %489 }
 0xf9a   :  { %v1475_v53 = vmul.f32 %v490_v52, %v474_v33 }
 0xf9c   :  { %v501_v54 = vpack.c.bf16 %v1475_v53, %v1475_v53 }
 0xf9e   :  { %503 = vrot.lane.b32.xlu2 %v501_v54, %s1273_s3 }
 0xfa9   :  { %v681_v55 = vpop.permute.xlu1 %680 }
 0xfaa   :  { %v683_v56 = vmul.f32 %v681_v55, %v665_v39 }
 0xfac   :  { %v685_v57 = vpack.c.bf16 %v683_v56, %v683_v56 }
 0xfae   :  { %687 = vrot.lane.b32.xlu0 %v685_v57, %s1273_s3 }
 0xff8   :  { %v504_v58 = vpop.permute.xlu2 %503 }
 0xff9   :  { %1091 = vmatmul.msk.bf16.vlgmr.msra.gmra.mxu2 %vm86_vm0, %v504_v58 }
 0xffa   :  { %830 = vmatpush.bf16.msra.mxu2 %v1437_v13 }
 0xffe   :  { %831 = vmatpush.bf16.msra.mxu2 %v1443_v14 }
0x1020   :  { %v688_v59 = vpop.permute.xlu0 %687 }
0x1021   :  { %1112 = vmatmul.msk.bf16.vlgmr.msrb.gmra.mxu2 %vm86_vm0, %v688_v59 }
0x1022   :  { %962 = vmatpush.bf16.msrb.mxu2 %v1437_v13 }
0x1026   :  { %963 = vmatpush.bf16.msrb.mxu2 %v1443_v14 }
0x107c   :  { %v1487_v60 = vpop.f32.mrf.mxu2 }
0x1084   :  { %v519_v61 = vpop.f32.mrf.mxu2 }
0x10a4   :  { %v701_v63 = vpop.f32.mrf.mxu2 }
0x10a5   :  { %v705_v0 = vadd.f32 %v701_v63, %v610_v24 }
0x10a7   :  { %1197 = vtanh.f32 %v705_v0  ;;  %v706_v4 = vmul.f32 0.5, %v705_v0 }
0x10a9   :  { %1199 = vtanh.f32 %v706_v4 }
0x10ac   :  { %v703_v2 = vpop.f32.mrf.mxu2 }
0x10ad   :  { %v1198_v3 = vpop.eup %1197 }
0x10ae   :  { %713 = vrot.lane.b32.xlu1 %v1198_v3, %s1272_s19 }
0x10af   :  { %v1200_v45 = vpop.eup %1199 }
0x10b0   :  { %v708_v7 = vmul.f32 0.5, %v1200_v45 }
0x10b2   :  { %v709_v8 = vadd.f32 0.5, %v708_v7 }
0x10b4   :  { %v711_v13 = vmul.f32 %v709_v8, %v677_v50 }
0x10b6   :  { %290 = vrot.lane.b32.xlu1 %v1375_v1, %s1273_s3 }
0x1120   :  { %v714_v9 = vpop.permute.xlu1 %713 }
0x1121   :  { %v716_v11 = vmul.f32 %v714_v9, %v709_v8 }
0x1123   :  { %718 = vrot.lane.b32.xlu2 %v716_v11, %s1273_s3 }
0x1128   :  { %v291_v12 = vpop.permute.xlu1 %290 }
0x1129   :  { %294 = vst.msk [vmem:[#allocation3 + $0x10] sm:$0xff] %vm86_vm0, %v291_v12 }
0x112b   :  { %341 = vrot.lane.b32.xlu2 %v1389_v25, %s1273_s3 }
0x1130   :  { %v561_v17 = vld [vmem:[#allocation3 + $0x10] sm:$0xff] }
0x117d   :  { %v719_v14 = vpop.permute.xlu2 %718 }
0x117e   :  { %v721_v15 = vadd.f32 %v719_v14, %v711_v13 }
0x1180   :  { %1201 = vtanh.f32 %v721_v15 }
0x1185   :  { %v342_v1 = vpop.permute.xlu2 %341 }
0x1186   :  { %v1202_v16 = vpop.eup %1201  ;;  %345 = vst.msk [vmem:[#allocation3 + $0x18] sm:$0xff] %vm86_vm0, %v342_v1 }
0x1187   :  { %724 = vrot.lane.b32.xlu0 %v1202_v16, %s1272_s19 }
0x118d   :  { %v562_v18 = vld [vmem:[#allocation3 + $0x18] sm:$0xff] }
0x118e   :  { %v568_v19 = vpack.c.bf16 %v562_v18, %v561_v17 }
0x1190   :  { %1101 = vmatmul.msk.bf16.gmra.mxu3 %vm86_vm0, %v568_v19 }
0x11f9   :  { %v725_v20 = vpop.permute.xlu0 %724 }
0x11fa   :  { %v727_v21 = vmul.f32 %v725_v20, %v709_v8  ;;  %v126_v20 = vadd.f32 %v1345_v6, %v1502_v23 }
0x11fc   :  { %v729_v5 = vpack.c.bf16 %v727_v21, %v727_v21 }
0x11fe   :  { %731 = vrot.lane.b32.xlu0 %v729_v5, %s1273_s3  ;;  %v521_v5 = vadd.f32 %v1487_v60, %v126_v20 }
0x1213   :  { %v612_v26 = vpop.f32.mrf.mxu3 }
0x1214   :  { %v613_v27 = vadd.f32 %v1463_v22, %v612_v26 }
0x121b   :  { %v614_v49 = vpop.f32.mrf.mxu3 }
0x121c   :  { %v615_v50 = vadd.f32 %v1463_v22, %v614_v49 }
0x1270   :  { %v732_v25 = vpop.permute.xlu0 %731 }
0x1271   :  { %1113 = vmatmul.msk.bf16.vlgmr.msrb.gmra.mxu0 %vm86_vm0, %v732_v25 }
0x12ee   :  { %v745_v28 = vpop.f32.mrf.mxu0 }
0x12ef   :  { %v749_v29 = vadd.f32 %v745_v28, %v613_v27 }
0x12f1   :  { %1203 = vtanh.f32 %v749_v29  ;;  %v750_v32 = vmul.f32 0.5, %v749_v29 }
0x12f3   :  { %1205 = vtanh.f32 %v750_v32  ;;  %v522_v32 = vmul.f32 0.5, %v521_v5 }
0x12f6   :  { %v747_v30 = vpop.f32.mrf.mxu0 }
0x12f7   :  { %v1204_v31 = vpop.eup %1203 }
0x12f8   :  { %757 = vrot.lane.b32.xlu1 %v1204_v31, %s1272_s19 }
0x12f9   :  { %v1206_v33 = vpop.eup %1205 }
0x12fa   :  { %v752_v34 = vmul.f32 0.5, %v1206_v33 }
0x12fc   :  { %v753_v35 = vadd.f32 0.5, %v752_v34 }
0x12fe   :  { %v755_v38 = vmul.f32 %v753_v35, %v721_v15 }
0x136a   :  { %v758_v36 = vpop.permute.xlu1 %757 }
0x136b   :  { %v760_v37 = vmul.f32 %v758_v36, %v753_v35 }
0x136d   :  { %762 = vrot.lane.b32.xlu2 %v760_v37, %s1273_s3 }
0x13c7   :  { %v763_v39 = vpop.permute.xlu2 %762 }
0x13c8   :  { %v765_v40 = vadd.f32 %v763_v39, %v755_v38 }
0x13ca   :  { %1207 = vtanh.f32 %v765_v40 }
0x13d0   :  { %v1208_v41 = vpop.eup %1207 }
0x13d1   :  { %768 = vrot.lane.b32.xlu0 %v1208_v41, %s1272_s19 }
0x1443   :  { %v769_v42 = vpop.permute.xlu0 %768 }
0x1444   :  { %v771_v43 = vmul.f32 %v769_v42, %v753_v35 }
0x1446   :  { %v773_v47 = vpack.c.bf16 %v771_v43, %v771_v43 }
0x1448   :  { %775 = vrot.lane.b32.xlu1 %v773_v47, %s1273_s3 }
0x14ba   :  { %v776_v48 = vpop.permute.xlu1 %775 }
0x14bb   :  { %1114 = vmatmul.msk.bf16.vlgmr.msra.gmra.mxu1 %vm86_vm0, %v776_v48 }
0x1538   :  { %v789_v51 = vpop.f32.mrf.mxu1 }
0x1539   :  { %v793_v52 = vadd.f32 %v789_v51, %v615_v50 }
0x153b   :  { %1209 = vtanh.f32 %v793_v52  ;;  %v794_v56 = vmul.f32 0.5, %v793_v52 }
0x153d   :  { %1211 = vtanh.f32 %v794_v56 }
0x1540   :  { %v791_v54 = vpop.f32.mrf.mxu1 }
0x1541   :  { %v1210_v55 = vpop.eup %1209 }
0x1542   :  { %801 = vrot.lane.b32.xlu2 %v1210_v55, %s1272_s19 }
0x1543   :  { %v1212_v57 = vpop.eup %1211 }
0x1544   :  { %v796_v58 = vmul.f32 0.5, %v1212_v57 }
0x1546   :  { %v797_v59 = vadd.f32 0.5, %v796_v58 }
0x1548   :  { %v799_v63 = vmul.f32 %v797_v59, %v765_v40 }
0x154a   :  { %392 = vrot.lane.b32.xlu2 %v1399_v46, %s1273_s3 }
0x159c   :  { %v802_v61 = vpop.permute.xlu2 %801 }
0x159d   :  { %v804_v62 = vmul.f32 %v802_v61, %v797_v59 }
0x159f   :  { %806 = vrot.lane.b32.xlu0 %v804_v62, %s1273_s3 }
0x15a4   :  { %v393_v24 = vpop.permute.xlu2 %392 }
0x15a5   :  { %396 = vst.msk [vmem:[#allocation3 + $0x20] sm:$0xff] %vm86_vm0, %v393_v24 }
0x15a7   :  { %443 = vrot.lane.b32.xlu0 %v1425_v10, %s1273_s3 }
0x15ac   :  { %v563_v4 = vld [vmem:[#allocation3 + $0x20] sm:$0xff] }
0x1611   :  { %v807_v0 = vpop.permute.xlu0 %806 }
0x1612   :  { %v809_v2 = vadd.f32 %v807_v0, %v799_v63 }
0x1614   :  { %1213 = vtanh.f32 %v809_v2 }
0x1619   :  { %v444_v46 = vpop.permute.xlu0 %443 }
0x161a   :  { %v1214_v3 = vpop.eup %1213  ;;  %447 = vst.msk [vmem:[#allocation3 + $0x28] sm:$0xff] %vm86_vm0, %v444_v46 }
0x161b   :  { %812 = vrot.lane.b32.xlu1 %v1214_v3, %s1272_s19 }
0x1621   :  { %v564_v45 = vld [vmem:[#allocation3 + $0x28] sm:$0xff] }
0x1622   :  { %v569_v7 = vpack.c.bf16 %v564_v45, %v563_v4 }
0x1624   :  { %1102 = vmatmul.msk.bf16.gmra.mxu3 %vm86_vm0, %v569_v7 }
0x168d   :  { %v813_v8 = vpop.permute.xlu1 %812 }
0x168e   :  { %v815_v9 = vmul.f32 %v813_v8, %v797_v59 }
0x1690   :  { %v817_v11 = vpack.c.bf16 %v815_v9, %v815_v9 }
0x1692   :  { %819 = vrot.lane.b32.xlu1 %v817_v11, %s1273_s3 }
0x16a7   :  { %v617_v12 = vpop.f32.mrf.mxu3 }
0x16a8   :  { %v618_v13 = vadd.f32 %v1463_v22, %v617_v12 }
0x16af   :  { %v619_v39 = vpop.f32.mrf.mxu3 }
0x16b0   :  { %v620_v40 = vadd.f32 %v1463_v22, %v619_v39 }
0x1704   :  { %v820_v10 = vpop.permute.xlu1 %819 }
0x1705   :  { %1115 = vmatmul.msk.bf16.vlgmr.msra.gmra.mxu2 %vm86_vm0, %v820_v10 }
0x1788   :  { %v833_v14 = vpop.f32.mrf.mxu2 }
0x1789   :  { %v837_v15 = vadd.f32 %v833_v14, %v618_v13 }
0x178b   :  { %1215 = vtanh.f32 %v837_v15  ;;  %v838_v17 = vmul.f32 0.5, %v837_v15 }
0x178d   :  { %1217 = vtanh.f32 %v838_v17 }
0x178e   :  { %1219 = vtanh.f32 %v521_v5 }
0x1790   :  { %v835_v1 = vpop.f32.mrf.mxu2 }
0x1791   :  { %v1216_v16 = vpop.eup %1215 }
0x1792   :  { %845 = vrot.lane.b32.xlu2 %v1216_v16, %s1272_s19 }
0x1793   :  { %v1218_v18 = vpop.eup %1217 }
0x1794   :  { %v840_v19 = vmul.f32 0.5, %v1218_v18  ;;  %v1220_v27 = vpop.eup %1219 }
0x1796   :  { %v841_v21 = vadd.f32 0.5, %v840_v19 }
0x1798   :  { %v843_v28 = vmul.f32 %v841_v21, %v809_v2 }
0x17ec   :  { %v846_v25 = vpop.permute.xlu2 %845 }
0x17ed   :  { %v848_v26 = vmul.f32 %v846_v25, %v841_v21 }
0x17ef   :  { %850 = vrot.lane.b32.xlu0 %v848_v26, %s1273_s3 }
0x17f7   :  { %529 = vrot.lane.b32.xlu0 %v1220_v27, %s1272_s19 }
0x1861   :  { %v851_v29 = vpop.permute.xlu0 %850 }
0x1862   :  { %v853_v30 = vadd.f32 %v851_v29, %v843_v28 }
0x1864   :  { %1221 = vtanh.f32 %v853_v30 }
0x1865   :  { %1223 = vtanh.f32 %v522_v32 }
0x1869   :  { %v530_v35 = vpop.permute.xlu0 %529 }
0x186a   :  { %v1222_v31 = vpop.eup %1221 }
0x186b   :  { %856 = vrot.lane.b32.xlu1 %v1222_v31, %s1272_s19  ;;  %v1224_v60 = vpop.eup %1223 }
0x186c   :  { %v524_v34 = vmul.f32 0.5, %v1224_v60 }
0x186e   :  { %v525_v36 = vadd.f32 0.5, %v524_v34 }
0x1870   :  { %v532_v37 = vmul.f32 %v530_v35, %v525_v36  ;;  %v527_v47 = vmul.f32 %v525_v36, %v1470_v44 }
0x18dd   :  { %v857_v6 = vpop.permute.xlu1 %856 }
0x18de   :  { %v859_v23 = vmul.f32 %v857_v6, %v841_v21 }
0x18e0   :  { %v861_v33 = vpack.c.bf16 %v859_v23, %v859_v23 }
0x18e2   :  { %863 = vrot.lane.b32.xlu2 %v861_v33, %s1273_s3 }
0x18ea   :  { %534 = vrot.lane.b32.xlu2 %v532_v37, %s1273_s3 }
0x193c   :  { %v864_v38 = vpop.permute.xlu2 %863 }
0x193d   :  { %1116 = vmatmul.msk.bf16.vlgmr.msra.gmra.mxu0 %vm86_vm0, %v864_v38 }
0x1944   :  { %v535_v43 = vpop.permute.xlu2 %534 }
0x1945   :  { %v537_v48 = vadd.f32 %v535_v43, %v527_v47  ;;  %v1140_v43 = vld [vmem:[%s1579_s7] sm:$0xff] }
0x19ba   :  { %v877_v41 = vpop.f32.mrf.mxu0 }
0x19bb   :  { %v881_v42 = vadd.f32 %v877_v41, %v620_v40 }
0x19bd   :  { %1225 = vtanh.f32 %v881_v42  ;;  %v882_v52 = vmul.f32 0.5, %v881_v42  ;;  %v1141_v42 = vld [vmem:[%s1579_s7 + $0x8] sm:$0xff] }
0x19be   :  { %1227 = vtanh.f32 %v537_v48  ;;  %1025 = vmatpush.bf16.msrb.mxu0 %v1141_v42 }
0x19bf   :  { %1229 = vtanh.f32 %v882_v52 }
0x19c2   :  { %v879_v49 = vpop.f32.mrf.mxu0  ;;  %1026 = vmatpush.bf16.msrb.mxu0 %v1140_v43 }
0x19c3   :  { %v1226_v50 = vpop.eup %1225 }
0x19c4   :  { %889 = vrot.lane.b32.xlu1 %v1226_v50, %s1272_s19  ;;  %v1228_v51 = vpop.eup %1227 }
0x19c5   :  { %v1230_v54 = vpop.eup %1229 }
0x19c6   :  { %v884_v55 = vmul.f32 0.5, %v1230_v54 }
0x19c8   :  { %v885_v56 = vadd.f32 0.5, %v884_v55 }
0x19ca   :  { %v887_v61 = vmul.f32 %v885_v56, %v853_v30 }
0x19cc   :  { %540 = vrot.lane.b32.xlu1 %v1228_v51, %s1272_s19  ;;  %v1148_v51 = vld [vmem:[%s1580_s8] ss:$0 sm:$0xff] }
0x1a36   :  { %v890_v57 = vpop.permute.xlu1 %889 }
0x1a37   :  { %v892_v58 = vmul.f32 %v890_v57, %v885_v56 }
0x1a39   :  { %894 = vrot.lane.b32.xlu0 %v892_v58, %s1273_s3 }
0x1a3e   :  { %v541_v59 = vpop.permute.xlu1 %540 }
0x1a3f   :  { %v543_v44 = vmul.f32 %v541_v59, %v525_v36 }
0x1a41   :  { %494 = vrot.lane.b32.xlu0 %v1475_v53, %s1273_s3  ;;  %545 = vrot.lane.b32.xlu1 %v543_v44, %s1273_s3 }
0x1aab   :  { %v895_v62 = vpop.permute.xlu0 %894 }
0x1aac   :  { %v897_v24 = vadd.f32 %v895_v62, %v887_v61 }
0x1aae   :  { %1231 = vtanh.f32 %v897_v24 }
0x1ab3   :  { %v495_v63 = vpop.permute.xlu0 %494  ;;  %v546_v0 = vpop.permute.xlu1 %545 }
0x1ab4   :  { %v1232_v2 = vpop.eup %1231  ;;  %498 = vst.msk [vmem:[#allocation3 + $0x30] sm:$0xff] %vm86_vm0, %v495_v63 }
0x1ab5   :  { %549 = vst.msk [vmem:[#allocation3 + $0x38] sm:$0xff] %vm86_vm0, %v546_v0  ;;  %900 = vrot.lane.b32.xlu2 %v1232_v2, %s1272_s19 }
0x1abb   :  { %v565_v46 = vld [vmem:[#allocation3 + $0x30] sm:$0xff] }
0x1abc   :  { %v566_v3 = vld [vmem:[#allocation3 + $0x38] sm:$0xff] }
0x1abd   :  { %v570_v4 = vpack.c.bf16 %v566_v3, %v565_v46 }
0x1abf   :  { %1103 = vmatmul.msk.bf16.gmra.mxu3 %vm86_vm0, %v570_v4 }
0x1b0f   :  { %v901_v53 = vpop.permute.xlu2 %900 }
0x1b10   :  { %v903_v45 = vmul.f32 %v901_v53, %v885_v56 }
0x1b12   :  { %v905_v7 = vpack.c.bf16 %v903_v45, %v903_v45 }
0x1b14   :  { %907 = vrot.lane.b32.xlu2 %v905_v7, %s1273_s3 }
0x1b42   :  { %v622_v9 = vpop.f32.mrf.mxu3 }
0x1b43   :  { %v623_v11 = vadd.f32 %v1463_v22, %v622_v9 }
0x1b4a   :  { %v624_v30 = vpop.f32.mrf.mxu3 }
0x1b4b   :  { %v625_v31 = vadd.f32 %v1463_v22, %v624_v30 }
0x1b6e   :  { %v908_v8 = vpop.permute.xlu2 %907 }
0x1b6f   :  { %1117 = vmatmul.msk.bf16.vlgmr.msrb.gmra.mxu1 %vm86_vm0, %v908_v8 }
0x1bec   :  { %v921_v10 = vpop.f32.mrf.mxu1 }
0x1bed   :  { %v925_v12 = vadd.f32 %v921_v10, %v623_v11 }
0x1bef   :  { %1233 = vtanh.f32 %v925_v12  ;;  %v926_v15 = vmul.f32 0.5, %v925_v12 }
0x1bf1   :  { %1235 = vtanh.f32 %v926_v15 }
0x1bf4   :  { %v923_v13 = vpop.f32.mrf.mxu1 }
0x1bf5   :  { %v1234_v14 = vpop.eup %1233 }
0x1bf6   :  { %933 = vrot.lane.b32.xlu0 %v1234_v14, %s1272_s19 }
0x1bf7   :  { %v1236_v1 = vpop.eup %1235 }
0x1bf8   :  { %v928_v16 = vmul.f32 0.5, %v1236_v1 }
0x1bfa   :  { %v929_v17 = vadd.f32 0.5, %v928_v16 }
0x1bfc   :  { %v931_v20 = vmul.f32 %v929_v17, %v897_v24 }
0x1c68   :  { %v934_v18 = vpop.permute.xlu0 %933 }
0x1c69   :  { %v936_v19 = vmul.f32 %v934_v18, %v929_v17 }
0x1c6b   :  { %938 = vrot.lane.b32.xlu1 %v936_v19, %s1273_s3 }
0x1cdd   :  { %v939_v21 = vpop.permute.xlu1 %938 }
0x1cde   :  { %v941_v5 = vadd.f32 %v939_v21, %v931_v20 }
0x1ce0   :  { %1237 = vtanh.f32 %v941_v5 }
0x1ce6   :  { %v1238_v25 = vpop.eup %1237 }
0x1ce7   :  { %944 = vrot.lane.b32.xlu2 %v1238_v25, %s1272_s19 }
0x1d41   :  { %v945_v26 = vpop.permute.xlu2 %944 }
0x1d42   :  { %v947_v27 = vmul.f32 %v945_v26, %v929_v17 }
0x1d44   :  { %v949_v28 = vpack.c.bf16 %v947_v27, %v947_v27 }
0x1d46   :  { %951 = vrot.lane.b32.xlu0 %v949_v28, %s1273_s3 }
0x1db8   :  { %v952_v29 = vpop.permute.xlu0 %951 }
0x1db9   :  { %1118 = vmatmul.msk.bf16.vlgmr.msrb.gmra.mxu2 %vm86_vm0, %v952_v29 }
0x1e3c   :  { %v965_v32 = vpop.f32.mrf.mxu2 }
0x1e3d   :  { %v969_v6 = vadd.f32 %v965_v32, %v625_v31 }
0x1e3f   :  { %1239 = vtanh.f32 %v969_v6  ;;  %v970_v33 = vmul.f32 0.5, %v969_v6 }
0x1e41   :  { %1241 = vtanh.f32 %v970_v33 }
0x1e44   :  { %v967_v23 = vpop.f32.mrf.mxu2 }
0x1e45   :  { %v1240_v60 = vpop.eup %1239 }
0x1e46   :  { %977 = vrot.lane.b32.xlu1 %v1240_v60, %s1272_s19 }
0x1e47   :  { %v1242_v34 = vpop.eup %1241 }
0x1e48   :  { %v972_v35 = vmul.f32 0.5, %v1242_v34 }
0x1e4a   :  { %v973_v36 = vadd.f32 0.5, %v972_v35 }
0x1e4c   :  { %v975_v39 = vmul.f32 %v973_v36, %v941_v5 }
0x1eb8   :  { %v978_v37 = vpop.permute.xlu1 %977 }
0x1eb9   :  { %v980_v38 = vmul.f32 %v978_v37, %v973_v36 }
0x1ebb   :  { %982 = vrot.lane.b32.xlu2 %v980_v38, %s1273_s3 }
0x1f15   :  { %v983_v40 = vpop.permute.xlu2 %982 }
0x1f16   :  { %v985_v41 = vadd.f32 %v983_v40, %v975_v39 }
0x1f18   :  { %1243 = vtanh.f32 %v985_v41 }
0x1f1e   :  { %v1244_v22 = vpop.eup %1243 }
0x1f1f   :  { %988 = vrot.lane.b32.xlu0 %v1244_v22, %s1272_s19  ;;  %s1040_s19 = sshll.u32 %s1581_s9, 4  ;;  %s1041_s19 = int_to_ptr.hbm [resolvable:$true] %s1040_s19 }
0x1f91   :  { %v989_v47 = vpop.permute.xlu0 %988 }
0x1f92   :  { %v991_v48 = vmul.f32 %v989_v47, %v973_v36 }
0x1f94   :  { %v992_v49 = vpack.c.bf16 %v991_v48, %v991_v48 }
0x1f96   :  { %1002 = vrot.lane.b32.xlu1 %v992_v49, %s1273_s3 }
0x2008   :  { %v1003_v50 = vpop.permute.xlu1 %1002 }
0x2009   :  { %1127 = vmatmul.msk.bf16.vlgmr.msrb.gmra.mxu0 %vm86_vm0, %v1003_v50 }
0x2086   :  { %v1028_v52 = vpop.f32.mrf.mxu0 }
0x2087   :  { %v1029_v54 = vadd.f32 %v1148_v51, %v1028_v52 }
0x2089   :  { %1032 = vst [vmem:[#allocation4] sm:$0xff] %v1029_v54 }
0x208a   :  { %1043 = dma.vmem_to_hbm [thread:$0]  %s1039_s18, 128, %s1041_s19, [#allocation5]  }
0x208e   :  { %v1030_v55 = vpop.f32.mrf.mxu0 }
0x208f   :  { %1269 = dma.done.wait [#allocation5], 128  }
0x2090   :  { %1270 = vsyncadd [#allocation5], 4294967168 }
0x2091   :  { %1048 = vsyncpa [#allocation5], 1 }

</bundles_post_ra>
